<compile_context>
chip_gen: v7x
topology: tpu7x:2x2x1
jax: 0.10.0
libtpu: 0.0.40
codegen_flags: <defaults>
</compile_context>

<pallas_src>
import functools

import jax
import jax.numpy as jnp
from jax import lax
from jax.experimental import pallas as pl
from jax.experimental.pallas import tpu as pltpu


def _round_up(x: int, k: int) -> int:
    return (x + k - 1) // k * k


def _vampu_kernel(chi_t_ref, chi_tau_ref, expk_ref,          # inputs
                  gram_ref, mu_ref,                          # outputs
                  z_ref,                                     # VMEM scratch
                  *, n_rows, tiles_per_split, mask_tail):
    """One batch tile: stream (TN, M) blocks of chi_t / chi_tau, accumulate
    the fused gram G += Z^T Z with Z = [chi_t | gamma~ | chi_tau | 1]."""
    s = pl.program_id(0)
    t = pl.program_id(1)
    tn, m = chi_t_ref.shape

    @pl.when(t == 0)
    def _init():
        # Gram output block index is constant over t -> the block stays
        # VMEM-resident; zero once per split and accumulate in place.
        gram_ref[...] = jnp.zeros_like(gram_ref)
        # Constant ones lane of Z (written once per split; invalid tail rows
        # only ever multiply against columns that are masked to zero).
        z_ref[:, 3 * m:3 * m + 1] = jnp.ones((tn, 1), z_ref.dtype)

    xt = chi_t_ref[...]                                      # (TN, M)
    xtau = chi_tau_ref[...]                                  # (TN, M)
    expk = expk_ref[...]                                     # (1, M)  f32

    if mask_tail:  # static flag -- only emitted when the batch is ragged
        row0 = (s * tiles_per_split + t) * tn
        rows = row0 + lax.broadcasted_iota(jnp.int32, (tn, 1), 0)
        valid = rows < n_rows
        xt = jnp.where(valid, xt, jnp.zeros_like(xt))
        xtau = jnp.where(valid, xtau, jnp.zeros_like(xtau))

    # Elementwise work in f32 on the VPU.
    xtau_f = xtau.astype(jnp.float32)
    ctk = jnp.sum(xtau_f * expk, axis=1, keepdims=True)      # (TN, 1) chi_tau @ exp(k)^T
    gamma = xtau_f * ctk                                     # un-normalised gamma~

    # Lane-dense mu~ row via a second (cheap) MXU matvec: (1, M) x (TN, M)^T.
    mu_row = lax.dot_general(expk, xtau_f, (((1,), (1,)), ((), ())),
                             preferred_element_type=jnp.float32)   # (1, TN)
    mu_ref[...] = mu_row[None]

    # Build Z in the persistent VMEM scratch with static lane slices
    # (no per-step concatenate temporary).
    zdt = z_ref.dtype
    z_ref[:, 0:m] = xt.astype(zdt)
    z_ref[:, m:2 * m] = gamma.astype(zdt)
    z_ref[:, 2 * m:3 * m] = xtau.astype(zdt)

    # Fused gram: contraction over batch rows (transposed-LHS matmul).
    # TODO(synk): confirm with pl.lower_as_mlir that the dim-0 contraction
    # lowers to a transposed vmatmul (no full-tile vxpose per step).
    z = z_ref[...]
    gram_ref[...] += lax.dot_general(
        z, z, (((0,), (0,)), ((), ())),
        preferred_element_type=jnp.float32)[None]


def vampu_forward(chi_t, chi_tau, u_kernel, *,
                  block_rows: int = 8192,
                  num_splits: int = 1,
                  use_bf16: bool = False):
    """Returns [u, v, C00, C11, C01, sigma, mu] with the PyTorch module's
    shapes: the first six tiled along the batch dim, mu is (N, 1)."""
    n, m = chi_tau.shape
    norm = 1.0 / n

    # bf16 operands halve HBM traffic on every generation (v5e included --
    # its MXU takes bf16 natively and elementwise math stays f32 in-kernel).
    # Casting here adds an XLA pass; the real win is feeding bf16 directly.
    in_dtype = jnp.bfloat16 if use_bf16 else jnp.float32
    chi_t = chi_t.astype(in_dtype)
    chi_tau = chi_tau.astype(in_dtype)
    exp_k = jnp.exp(u_kernel.astype(jnp.float32))            # (M,) -- tiny

    # ---- batch tile: as large as a conservative VMEM budget allows. ----
    sub = 16 if use_bf16 else 8                              # bf16 packs 2 rows/sublane
    tn = min(_round_up(max(block_rows, sub), sub), _round_up(n, sub))
    elt = 2 if use_bf16 else 4
    # lane-padded bytes/row: 2 inputs x 2 pipeline buffers + Z scratch.
    per_row = (4 * _round_up(m, 128) + _round_up(3 * m + 1, 128)) * elt
    budget = 24 * 1024 * 1024                                # safe on v7x (64 MiB phys)
    tn_cap = max(sub, (budget // per_row) // sub * sub)
    tn = min(tn, tn_cap)

    total_tiles = -(-n // tn)
    # Only split across cores if it divides evenly (avoids phantom tiles).
    splits = num_splits if (num_splits > 1 and total_tiles % num_splits == 0) else 1
    tiles_per_split = total_tiles // splits
    mask_tail = (total_tiles * tn != n)

    kernel = functools.partial(_vampu_kernel, n_rows=n,
                               tiles_per_split=tiles_per_split,
                               mask_tail=mask_tail)
    row_map = lambda s, t: (s * tiles_per_split + t, 0)
    g = 3 * m + 1

    gram, mu_tiles = pl.pallas_call(
        kernel,
        out_shape=(
            jax.ShapeDtypeStruct((splits, g, g), jnp.float32),        # partial grams
            jax.ShapeDtypeStruct((total_tiles, 1, tn), jnp.float32),  # lane-dense mu~
        ),
        grid_spec=pltpu.PrefetchScalarGridSpec(
            num_scalar_prefetch=0,
            grid=(splits, tiles_per_split),
            in_specs=[
                pl.BlockSpec((tn, m), row_map),                       # chi_t
                pl.BlockSpec((tn, m), row_map),                       # chi_tau
                pl.BlockSpec((1, m), lambda s, t: (0, 0)),            # exp(u_kernel)
            ],
            out_specs=(
                pl.BlockSpec((1, g, g), lambda s, t: (s, 0, 0)),
                pl.BlockSpec((1, 1, tn),
                             lambda s, t: (s * tiles_per_split + t, 0, 0)),
            ),
            scratch_shapes=[pltpu.VMEM((tn, g), in_dtype)],           # Z scratch
        ),
        compiler_params=pltpu.CompilerParams(
            dimension_semantics=("parallel", "arbitrary"),
            vmem_limit_bytes=32 * 1024 * 1024),
    )(chi_t, chi_tau, exp_k[None, :])

    # ---- tiny epilogue in XLA: O(M^2) + O(N) work. ----
    G = jnp.sum(gram, axis=0)                                # (3M+1, 3M+1)
    colsum_tau = G[3 * m, 2 * m:3 * m]                       # sum_n chi_tau[n, :]
    s_val = jnp.sum(colsum_tau * exp_k)                      # N * (chi_mean . exp_k)
    scale = n / s_val                                        # gamma = scale * gamma~
    u = (exp_k * scale)[None, :]                             # (1, M)
    c00 = norm * G[0:m, 0:m]
    c01 = (norm * scale) * G[0:m, m:2 * m]
    c11 = (norm * scale * scale) * G[m:2 * m, m:2 * m]
    sigma = (norm * scale) * G[m:2 * m, 2 * m:3 * m]
    v = ((norm * scale) * G[3 * m, m:2 * m]).reshape(m, 1)
    mu = ((norm * scale) * mu_tiles.reshape(-1)[:n]).reshape(n, 1)

    # _tile(): unsqueeze(0) + repeat(n_batch); kept lazy via broadcast_to.
    tile = lambda x: jnp.broadcast_to(x[None], (n,) + x.shape)
    return [tile(u), tile(v), tile(c00), tile(c11), tile(c01), tile(sigma), mu]


def _vampu_reference(chi_t, chi_tau, u_kernel):
    """Pure-JAX reference (mirrors the PyTorch forward literally)."""
    n = chi_t.shape[0]
    norm = 1.0 / n
    mm = functools.partial(jnp.matmul, precision=lax.Precision.HIGHEST)
    corr_tau = norm * mm(chi_tau.T, chi_tau)
    chi_mean = jnp.mean(chi_tau, axis=0, keepdims=True)
    kernel_u = jnp.exp(u_kernel)[None, :]
    u = kernel_u / jnp.sum(chi_mean * kernel_u, axis=1, keepdims=True)
    u_t = u.T
    v = mm(corr_tau, u_t)
    mu = norm * mm(chi_tau, u_t)
    sigma = mm((chi_tau * mu).T, chi_tau)
    gamma = chi_tau * mm(chi_tau, u_t)
    c00 = norm * mm(chi_t.T, chi_t)
    c11 = norm * mm(gamma.T, gamma)
    c01 = norm * mm(chi_t.T, gamma)
    tile = lambda x: jnp.broadcast_to(x[None], (n,) + x.shape)
    return [tile(u), tile(v), tile(c00), tile(c11), tile(c01), tile(sigma), mu]


def _check(outs, refs, rtol, atol, tag):
    names = ["u", "v", "C00", "C11", "C01", "sigma", "mu"]
    for name, o, r in zip(names, outs, refs):
        assert o.shape == r.shape, (tag, name, o.shape, r.shape)
        assert bool(jnp.allclose(o, r, rtol=rtol, atol=atol)), \
            f"mismatch vs reference ({tag}, {name})"


if __name__ == "__main__":
    M = 32  # units

    key = jax.random.PRNGKey(0)
    k1, k2, k3, k4 = jax.random.split(key, 4)
    # Deterministic parameter init, exactly as in VAMPU.__init__.
    u_kernel = (1.0 / M) * jnp.ones((M,), dtype=jnp.float32)

    N1 = 512
    chi_t1 = jax.nn.softmax(jax.random.normal(k1, (N1, M), jnp.float32), axis=-1)
    chi_tau1 = jax.nn.softmax(jax.random.normal(k2, (N1, M), jnp.float32), axis=-1)
    ref1 = _vampu_reference(chi_t1, chi_tau1, u_kernel)

    # --- case 1: default large tile (single grid step), f32 ---
    outs1 = jax.block_until_ready(vampu_forward(chi_t1, chi_tau1, u_kernel))
    _check(outs1, ref1, 2e-3, 1e-5, "f32-single-tile")

    # --- case 2: multi-tile grid + 2-way split (v7x-style), f32 ---
    outs2 = jax.block_until_ready(
        vampu_forward(chi_t1, chi_tau1, u_kernel, block_rows=128, num_splits=2))
    _check(outs2, ref1, 2e-3, 1e-5, "f32-split")

    # --- case 3: ragged batch (in-kernel tail masking, no padding), f32 ---
    N2 = 200
    chi_t2 = jax.nn.softmax(jax.random.normal(k3, (N2, M), jnp.float32), axis=-1)
    chi_tau2 = jax.nn.softmax(jax.random.normal(k4, (N2, M), jnp.float32), axis=-1)
    outs3 = jax.block_until_ready(
        vampu_forward(chi_t2, chi_tau2, u_kernel, block_rows=64, num_splits=2))
    _check(outs3, _vampu_reference(chi_t2, chi_tau2, u_kernel), 2e-3, 1e-5,
           "f32-ragged")

    # --- case 4: bf16 operands (all generations), looser tolerance ---
    outs4 = jax.block_until_ready(
        vampu_forward(chi_t1, chi_tau1, u_kernel, block_rows=128, use_bf16=True))
    _check(outs4, ref1, 5e-2, 5e-4, "bf16")

    print("KERNEL_OK")
</pallas_src>

<mosaic_0001>
module attributes {stable_mosaic.version = 11 : i64} {
  func.func @_vampu_kernel(%arg0: i32, %arg1: i32, %arg2: memref<512x32xf32, #tpu.memory_space<vmem>>, %arg3: memref<512x32xf32, #tpu.memory_space<vmem>>, %arg4: memref<1x32xf32, #tpu.memory_space<vmem>>, %arg5: memref<1x97x97xf32, #tpu.memory_space<vmem>>, %arg6: memref<1x1x512xf32, #tpu.memory_space<vmem>>, %arg7: memref<512x97xf32, #tpu.memory_space<vmem>>) attributes {dimension_semantics = [#tpu.dimension_semantics<parallel>, #tpu.dimension_semantics<arbitrary>], iteration_bounds = array<i64: 1, 1>, scalar_prefetch = 0 : i64, scratch_operands = 1 : i64, tpu.core_type = #tpu.core_type<tc>, window_params = [{transform_indices = @transform_0, window_bounds = array<i64: 512, 32>}, {transform_indices = @transform_1, window_bounds = array<i64: 512, 32>}, {pipeline_mode = #tpu.pipeline_mode<synchronous>, transform_indices = @transform_2, window_bounds = array<i64: 1, 32>}, {transform_indices = @transform_3, window_bounds = array<i64: 1, 97, 97>}, {transform_indices = @transform_4, window_bounds = array<i64: 1, 1, 512>}]} {
    %c0_i32 = arith.constant 0 : i32
    %0 = arith.cmpi eq, %arg1, %c0_i32 : i32
    %1 = arith.extui %0 : i1 to i32
    %c0_i32_0 = arith.constant 0 : i32
    %2 = arith.cmpi ne, %1, %c0_i32_0 : i32
    scf.if %2 {
      %cst_23 = arith.constant 0.000000e+00 : f32
      %24 = vector.broadcast %cst_23 : f32 to vector<1x97x97xf32>
      %c0_24 = arith.constant 0 : index
      %c0_25 = arith.constant 0 : index
      %c0_26 = arith.constant 0 : index
      %25 = vector.load %arg5[%c0_24, %c0_25, %c0_26] : memref<1x97x97xf32, #tpu.memory_space<vmem>>, vector<1x97x97xf32>
      tpu.vector_store %arg5[%c0_24, %c0_25, %c0_26], %24 {strides = array<i32>} : memref<1x97x97xf32, #tpu.memory_space<vmem>>, vector<1x97x97xf32>,
      %cst_27 = arith.constant 1.000000e+00 : f32
      %26 = vector.broadcast %cst_27 : f32 to vector<512x1xf32>
      %c0_28 = arith.constant 0 : index
      %c96 = arith.constant 96 : index
      %27 = vector.load %arg7[%c0_28, %c96] : memref<512x97xf32, #tpu.memory_space<vmem>>, vector<512x1xf32>
      tpu.vector_store %arg7[%c0_28, %c96], %26 {strides = array<i32>} : memref<512x97xf32, #tpu.memory_space<vmem>>, vector<512x1xf32>,
    } else {
    }
    %c0 = arith.constant 0 : index
    %c0_1 = arith.constant 0 : index
    %3 = vector.load %arg2[%c0, %c0_1] : memref<512x32xf32, #tpu.memory_space<vmem>>, vector<512x32xf32>
    %c0_2 = arith.constant 0 : index
    %c0_3 = arith.constant 0 : index
    %4 = vector.load %arg3[%c0_2, %c0_3] : memref<512x32xf32, #tpu.memory_space<vmem>>, vector<512x32xf32>
    %c0_4 = arith.constant 0 : index
    %c0_5 = arith.constant 0 : index
    %5 = vector.load %arg4[%c0_4, %c0_5] : memref<1x32xf32, #tpu.memory_space<vmem>>, vector<1x32xf32>
    %6 = vector.broadcast %5 : vector<1x32xf32> to vector<512x32xf32>
    %7 = arith.mulf %4, %6 : vector<512x32xf32>
    %cst = arith.constant dense<0.000000e+00> : vector<512xf32>
    %8 = vector.multi_reduction <add>, %7, %cst [1] : vector<512x32xf32> to vector<512xf32>
    %9 = vector.shape_cast %8 : vector<512xf32> to vector<512x1xf32>
    %10 = vector.broadcast %9 : vector<512x1xf32> to vector<512x32xf32>
    %11 = arith.mulf %4, %10 : vector<512x32xf32>
    %cst_6 = arith.constant dense<0.000000e+00> : vector<1x512xf32>
    %12 = tpu.matmul %5, %4, %cst_6 {dimension_numbers = #tpu.dot_dimension_numbers<[1], [1], [0], [0], [0, 0, 1, 0], [], []>} : vector<1x32xf32>, vector<512x32xf32>, vector<1x512xf32> -> vector<1x512xf32>
    %13 = vector.shape_cast %12 : vector<1x512xf32> to vector<1x1x512xf32>
    %c0_7 = arith.constant 0 : index
    %c0_8 = arith.constant 0 : index
    %c0_9 = arith.constant 0 : index
    %14 = vector.load %arg6[%c0_7, %c0_8, %c0_9] : memref<1x1x512xf32, #tpu.memory_space<vmem>>, vector<1x1x512xf32>
    tpu.vector_store %arg6[%c0_7, %c0_8, %c0_9], %13 {strides = array<i32>} : memref<1x1x512xf32, #tpu.memory_space<vmem>>, vector<1x1x512xf32>,
    %c0_10 = arith.constant 0 : index
    %c0_11 = arith.constant 0 : index
    %15 = vector.load %arg7[%c0_10, %c0_11] : memref<512x97xf32, #tpu.memory_space<vmem>>, vector<512x32xf32>
    tpu.vector_store %arg7[%c0_10, %c0_11], %3 {strides = array<i32>} : memref<512x97xf32, #tpu.memory_space<vmem>>, vector<512x32xf32>,
    %c0_12 = arith.constant 0 : index
    %c32 = arith.constant 32 : index
    %16 = vector.load %arg7[%c0_12, %c32] : memref<512x97xf32, #tpu.memory_space<vmem>>, vector<512x32xf32>
    tpu.vector_store %arg7[%c0_12, %c32], %11 {strides = array<i32>} : memref<512x97xf32, #tpu.memory_space<vmem>>, vector<512x32xf32>,
    %c0_13 = arith.constant 0 : index
    %c64 = arith.constant 64 : index
    %17 = vector.load %arg7[%c0_13, %c64] : memref<512x97xf32, #tpu.memory_space<vmem>>, vector<512x32xf32>
    tpu.vector_store %arg7[%c0_13, %c64], %4 {strides = array<i32>} : memref<512x97xf32, #tpu.memory_space<vmem>>, vector<512x32xf32>,
    %c0_14 = arith.constant 0 : index
    %c0_15 = arith.constant 0 : index
    %18 = vector.load %arg7[%c0_14, %c0_15] : memref<512x97xf32, #tpu.memory_space<vmem>>, vector<512x97xf32>
    %c0_16 = arith.constant 0 : index
    %c0_17 = arith.constant 0 : index
    %c0_18 = arith.constant 0 : index
    %19 = vector.load %arg5[%c0_16, %c0_17, %c0_18] : memref<1x97x97xf32, #tpu.memory_space<vmem>>, vector<1x97x97xf32>
    %cst_19 = arith.constant dense<0.000000e+00> : vector<97x97xf32>
    %20 = tpu.matmul %18, %18, %cst_19 {dimension_numbers = #tpu.dot_dimension_numbers<[0], [0], [1], [1], [0, 1, 1, 1], [], []>} : vector<512x97xf32>, vector<512x97xf32>, vector<97x97xf32> -> vector<97x97xf32>
    %21 = vector.shape_cast %20 : vector<97x97xf32> to vector<1x97x97xf32>
    %22 = arith.addf %19, %21 : vector<1x97x97xf32>
    %c0_20 = arith.constant 0 : index
    %c0_21 = arith.constant 0 : index
    %c0_22 = arith.constant 0 : index
    %23 = vector.load %arg5[%c0_20, %c0_21, %c0_22] : memref<1x97x97xf32, #tpu.memory_space<vmem>>, vector<1x97x97xf32>
    tpu.vector_store %arg5[%c0_20, %c0_21, %c0_22], %22 {strides = array<i32>} : memref<1x97x97xf32, #tpu.memory_space<vmem>>, vector<1x97x97xf32>,
    return
  }
  func.func @transform_0(%arg0: i32, %arg1: i32) -> (i32, i32) {
    %c1_i32 = arith.constant 1 : i32
    %0 = arith.muli %arg0, %c1_i32 : i32
    %1 = arith.addi %0, %arg1 : i32
    %c0_i32 = arith.constant 0 : i32
    %c0_i32_0 = arith.constant 0 : i32
    return %1, %c0_i32 : i32, i32
  }
  func.func @transform_1(%arg0: i32, %arg1: i32) -> (i32, i32) {
    %c1_i32 = arith.constant 1 : i32
    %0 = arith.muli %arg0, %c1_i32 : i32
    %1 = arith.addi %0, %arg1 : i32
    %c0_i32 = arith.constant 0 : i32
    %c0_i32_0 = arith.constant 0 : i32
    return %1, %c0_i32 : i32, i32
  }
  func.func @transform_2(%arg0: i32, %arg1: i32) -> (i32, i32) {
    %c0_i32 = arith.constant 0 : i32
    %c0_i32_0 = arith.constant 0 : i32
    %c0_i32_1 = arith.constant 0 : i32
    return %c0_i32, %c0_i32_0 : i32, i32
  }
  func.func @transform_3(%arg0: i32, %arg1: i32) -> (i32, i32, i32) {
    %c0_i32 = arith.constant 0 : i32
    %c0_i32_0 = arith.constant 0 : i32
    %c0_i32_1 = arith.constant 0 : i32
    return %arg0, %c0_i32, %c0_i32_0 : i32, i32, i32
  }
  func.func @transform_4(%arg0: i32, %arg1: i32) -> (i32, i32, i32) {
    %c1_i32 = arith.constant 1 : i32
    %0 = arith.muli %arg0, %c1_i32 : i32
    %1 = arith.addi %0, %arg1 : i32
    %c0_i32 = arith.constant 0 : i32
    %c0_i32_0 = arith.constant 0 : i32
    %c0_i32_1 = arith.constant 0 : i32
    return %1, %c0_i32, %c0_i32_0 : i32, i32, i32
  }
}

</mosaic_0001>

<bundles_post_ra>
// kernel: tpu_custom_call.1
= control target key start
LH: loop header
LB: loop body
LE: loop exit
PB: predicated region body
PF: predicated region fallthrough
CT: control target
= control target key end

     0   :  { %v4897_v1 = vlaneseq  ;;  %vm345_vm0 = vcmask 261120   ;;  %s4892_s0 = inlined_call_operand.vmem [shape: f32[512,32], index: 0, kind: input, shape index: {}]   ;;  %s4893_s1 = inlined_call_operand.vmem [shape: f32[512,32], index: 1, kind: input, shape index: {}]   ;;  %s4894_s2 = inlined_call_operand.vmem [shape: f32[1,32], index: 2, kind: input, shape index: {}]   ;;  %s4895_s3 = inlined_call_operand.vmem [shape: f32[1,97,97], index: 3, kind: output, shape index: {0}]   ;;  %s4896_s4 = inlined_call_operand.hbm [shape: f32[1,1,512], index: 4, kind: output, shape index: {1}]  }
   0x1   :  { %v2874_v0 = vld [vmem:[%s4894_s2] sm:$0x1]  ;;  %v2886_v3 = vld [vmem:[%s4893_s1 + $0x10] sm:$0xff]  ;;  %v2897_v6 = vld [vmem:[%s4893_s1 + $0x18] sm:$0xff] }
   0x2   :  { %4913 = vst [vmem:[#allocation6_spill] sm:$0xff] %v2874_v0  ;;  %2239 = vmatprep.mubr.msk.f32.mxu0 %vm345_vm0, %v2874_v0  ;;  %2273 = vmatprep.mubr.msk.f32.mxu1 %vm345_vm0, %v2874_v0  ;;  %v2881_v2 = vshrl.u32 %v4897_v1, 7  ;;  %v2892_v5 = vld [vmem:[%s4893_s1] sm:$0xff]  ;;  %v2902_v7 = vld [vmem:[%s4893_s1 + $0x8] sm:$0xff]  ;;  %v2936_v21 = vld [vmem:[%s4893_s1 + $0x38] sm:$0xff] }
   0x3   :  { %v2918_v13 = vld [vmem:[%s4893_s1 + $0x28] sm:$0xff]  ;;  %v2923_v14 = vld [vmem:[%s4893_s1 + $0x20] sm:$0xff]  ;;  %v2941_v22 = vld [vmem:[%s4893_s1 + $0x30] sm:$0xff] }
   0x4   :  { %4914 = vst [vmem:[#allocation7_spill] sm:$0xff] %v2881_v2  ;;  %v278_v4 = vsub.s32 0, %v2881_v2  ;;  %v2952_v27 = vld [vmem:[%s4893_s1 + $0x48] sm:$0xff]  ;;  %v2957_v28 = vld [vmem:[%s4893_s1 + $0x40] sm:$0xff]  ;;  %v2968_v33 = vld [vmem:[%s4893_s1 + $0x58] sm:$0xff] }
   0x5   :  { %v2973_v34 = vld [vmem:[%s4893_s1 + $0x50] sm:$0xff] }
   0x6   :  { %v2905_v8 = vrot.slane %v2874_v0, %v278_v4 }
   0x8   :  { %v283_v9 = vmul.f32 %v2905_v8, %v2886_v3  ;;  %v281_v10 = vmul.f32 %v2905_v8, %v2892_v5  ;;  %v284_v11 = vmul.f32 %v2905_v8, %v2897_v6  ;;  %v282_v12 = vmul.f32 %v2905_v8, %v2902_v7 }
   0x9   :  { %v286_v19 = vmul.f32 %v2905_v8, %v2918_v13  ;;  %v285_v20 = vmul.f32 %v2905_v8, %v2923_v14  ;;  %v288_v25 = vmul.f32 %v2905_v8, %v2936_v21  ;;  %v287_v26 = vmul.f32 %v2905_v8, %v2941_v22 }
   0xa   :  { %v352_v15 = vsel %vm345_vm0, %v283_v9, 0.0  ;;  %v346_v16 = vsel %vm345_vm0, %v281_v10, 0.0  ;;  %v355_v17 = vsel %vm345_vm0, %v284_v11, 0.0  ;;  %v349_v18 = vsel %vm345_vm0, %v282_v12, 0.0 }
   0xb   :  { %353 = vadd.xlane.f32.xlu1 %v352_v15  ;;  %347 = vadd.xlane.f32.xlu0 %v346_v16  ;;  %v361_v23 = vsel %vm345_vm0, %v286_v19, 0.0  ;;  %v358_v24 = vsel %vm345_vm0, %v285_v20, 0.0  ;;  %v367_v29 = vsel %vm345_vm0, %v288_v25, 0.0  ;;  %v364_v30 = vsel %vm345_vm0, %v287_v26, 0.0 }
   0xc   :  { %v290_v31 = vmul.f32 %v2905_v8, %v2952_v27  ;;  %v289_v32 = vmul.f32 %v2905_v8, %v2957_v28  ;;  %v292_v37 = vmul.f32 %v2905_v8, %v2968_v33  ;;  %v291_v38 = vmul.f32 %v2905_v8, %v2973_v34 }
   0xe   :  { %v373_v35 = vsel %vm345_vm0, %v290_v31, 0.0  ;;  %v370_v36 = vsel %vm345_vm0, %v289_v32, 0.0 }
   0xf   :  { %356 = vadd.xlane.f32.xlu1 %v355_v17  ;;  %350 = vadd.xlane.f32.xlu0 %v349_v18 }
  0x13   :  { %362 = vadd.xlane.f32.xlu1 %v361_v23  ;;  %359 = vadd.xlane.f32.xlu0 %v358_v24 }
  0x17   :  { %368 = vadd.xlane.f32.xlu1 %v367_v29  ;;  %365 = vadd.xlane.f32.xlu0 %v364_v30 }
  0x18   :  { %10 = vsyncpa [#allocation4], 0  ;;  %v2984_v39 = vld [vmem:[%s4893_s1 + $0x68] sm:$0xff]  ;;  %v2989_v40 = vld [vmem:[%s4893_s1 + $0x60] sm:$0xff]  ;;  %v379_v41 = vsel %vm345_vm0, %v292_v37, 0.0  ;;  %v376_v42 = vsel %vm345_vm0, %v291_v38, 0.0 }
  0x19   :  { %v294_v43 = vmul.f32 %v2905_v8, %v2984_v39  ;;  %v293_v44 = vmul.f32 %v2905_v8, %v2989_v40  ;;  %v3000_v45 = vld [vmem:[%s4893_s1 + $0x78] sm:$0xff]  ;;  %v3005_v46 = vld [vmem:[%s4893_s1 + $0x70] sm:$0xff]  ;;  %v3016_v51 = vld [vmem:[%s4893_s1 + $0x88] sm:$0xff]  ;;  %s2840_s15 = smov 64   ;;  %vm81_vm2 = vcmask 794368   ;;  %s2842_s18 = smov 32  }
  0x1a   :  { %4915 = vst [vmem:[#allocation8_spill] sm:$0xff] %v3000_v45  ;;  %v296_v49 = vmul.f32 %v2905_v8, %v3000_v45  ;;  %v295_v50 = vmul.f32 %v2905_v8, %v3005_v46  ;;  %v3021_v52 = vld [vmem:[%s4893_s1 + $0x80] sm:$0xff]  ;;  %v298_v55 = vmul.f32 %v2905_v8, %v3016_v51  ;;  %v3032_v57 = vld [vmem:[%s4893_s1 + $0x90] sm:$0xff]  ;;  %v3037_v58 = vld [vmem:[%s4893_s1 + $0x98] sm:$0xff]  ;;  %vm1292_vm3 = vcmask 523520   ;;  %s2845_s21 = smov [#allocation3]  }
  0x1b   :  { %374 = vadd.xlane.f32.xlu1 %v373_v35  ;;  %371 = vadd.xlane.f32.xlu0 %v370_v36  ;;  %v385_v47 = vsel %vm345_vm0, %v294_v43, 0.0  ;;  %v382_v48 = vsel %vm345_vm0, %v293_v44, 0.0  ;;  %v297_v56 = vmul.f32 %v2905_v8, %v3021_v52  ;;  %v299_v61 = vmul.f32 %v2905_v8, %v3032_v57  ;;  %v3048_v63 = vld [vmem:[%s4893_s1 + $0xa0] sm:$0xff]  ;;  %v3053_v4 = vld [vmem:[%s4893_s1 + $0xa8] sm:$0xff]  ;;  %v3064_v15 = vld [vmem:[%s4893_s1 + $0xb0] sm:$0xff] }
  0x1c   :  { %v391_v53 = vsel %vm345_vm0, %v296_v49, 0.0  ;;  %v388_v54 = vsel %vm345_vm0, %v295_v50, 0.0  ;;  %v397_v59 = vsel %vm345_vm0, %v298_v55, 0.0  ;;  %v300_v62 = vmul.f32 %v2905_v8, %v3037_v58  ;;  %v3069_v16 = vld [vmem:[%s4893_s1 + $0xb8] sm:$0xff]  ;;  %v3080_v23 = vld [vmem:[%s4893_s1 + $0xc0] sm:$0xff]  ;;  %v3085_v24 = vld [vmem:[%s4893_s1 + $0xc8] sm:$0xff] }
  0x1d   :  { %v394_v60 = vsel %vm345_vm0, %v297_v56, 0.0  ;;  %v400_v9 = vsel %vm345_vm0, %v299_v61, 0.0  ;;  %v301_v11 = vmul.f32 %v2905_v8, %v3048_v63  ;;  %v302_v12 = vmul.f32 %v2905_v8, %v3053_v4  ;;  %v3096_v31 = vld [vmem:[%s4893_s1 + $0xd0] sm:$0xff]  ;;  %v3101_v32 = vld [vmem:[%s4893_s1 + $0xd8] sm:$0xff]  ;;  %v3128_v49 = vld [vmem:[%s4893_s1 + $0x180] sm:$0xff] }
  0x1e   :  { %v403_v10 = vsel %vm345_vm0, %v300_v62, 0.0  ;;  %v303_v19 = vmul.f32 %v2905_v8, %v3064_v15  ;;  %v304_v20 = vmul.f32 %v2905_v8, %v3069_v16  ;;  %v305_v29 = vmul.f32 %v2905_v8, %v3080_v23  ;;  %v3133_v50 = vld [vmem:[%s4893_s1 + $0x100] sm:$0xff]  ;;  %v3304_v1 = vld [vmem:[%s4893_s1 + $0x1d8] sm:$0xff]  ;;  %vm3409_vm1 = vmpackc.low %vm345_vm0, %vm345_vm0 }
  0x1f   :  { %380 = vadd.xlane.f32.xlu1 %v379_v41  ;;  %377 = vadd.xlane.f32.xlu0 %v376_v42  ;;  %v406_v17 = vsel %vm345_vm0, %v301_v11, 0.0  ;;  %v409_v18 = vsel %vm345_vm0, %v302_v12, 0.0  ;;  %v306_v30 = vmul.f32 %v2905_v8, %v3085_v24  ;;  %v307_v37 = vmul.f32 %v2905_v8, %v3096_v31  ;;  %v3112_v41 = vld [vmem:[%s4893_s1 + $0xe0] sm:$0xff]  ;;  %v3117_v42 = vld [vmem:[%s4893_s1 + $0xe8] sm:$0xff]  ;;  %v3160_v11 = vld [vmem:[%s4893_s1 + $0x190] sm:$0xff]  ;;  %4918 = vst [vmem:[#allocation11_spill] sm:$0xff] %v3304_v1 }
  0x20   :  { %v412_v25 = vsel %vm345_vm0, %v303_v19, 0.0  ;;  %v415_v26 = vsel %vm345_vm0, %v304_v20, 0.0  ;;  %v418_v35 = vsel %vm345_vm0, %v305_v29, 0.0  ;;  %v308_v38 = vmul.f32 %v2905_v8, %v3101_v32  ;;  %v3165_v12 = vld [vmem:[%s4893_s1 + $0x110] sm:$0xff]  ;;  %v3320_v0 = vld [vmem:[%s4893_s1 + $0x1e0] sm:$0xff] }
  0x21   :  { %v421_v36 = vsel %vm345_vm0, %v306_v30, 0.0  ;;  %v424_v43 = vsel %vm345_vm0, %v307_v37, 0.0  ;;  %v329_v55 = vmul.f32 %v2905_v8, %v3128_v49  ;;  %v313_v56 = vmul.f32 %v2905_v8, %v3133_v50  ;;  %v3192_v37 = vld [vmem:[%s4893_s1 + $0x1a0] sm:$0xff]  ;;  %4920 = vst [vmem:[#allocation13_spill] sm:$0xff] %v3320_v0 }
  0x22   :  { %v427_v44 = vsel %vm345_vm0, %v308_v38, 0.0  ;;  %v315_v20 = vmul.f32 %v2905_v8, %v3165_v12  ;;  %v3197_v38 = vld [vmem:[%s4893_s1 + $0x120] sm:$0xff]  ;;  %vm1549_vm4 = vcmask 785920   ;;  %vm66_vm6 = vcmask 793600  }
  0x23   :  { %386 = vadd.xlane.f32.xlu1 %v385_v47  ;;  %383 = vadd.xlane.f32.xlu0 %v382_v48  ;;  %v309_v47 = vmul.f32 %v2905_v8, %v3112_v41  ;;  %v310_v48 = vmul.f32 %v2905_v8, %v3117_v42  ;;  %v490_v61 = vsel %vm345_vm0, %v329_v55, 0.0  ;;  %v442_v62 = vsel %vm345_vm0, %v313_v56, 0.0 }
  0x24   :  { %vm79_vm7 = vcmask 786432  }
  0x27   :  { %392 = vadd.xlane.f32.xlu1 %v391_v53  ;;  %389 = vadd.xlane.f32.xlu0 %v388_v54  ;;  %v430_v53 = vsel %vm345_vm0, %v309_v47, 0.0  ;;  %v433_v54 = vsel %vm345_vm0, %v310_v48, 0.0  ;;  %v317_v48 = vmul.f32 %v2905_v8, %v3197_v38 }
  0x2b   :  { %398 = vadd.xlane.f32.xlu1 %v397_v59  ;;  %395 = vadd.xlane.f32.xlu0 %v394_v60  ;;  %v3144_v59 = vld [vmem:[%s4893_s1 + $0x188] sm:$0xff] }
  0x2c   :  { %v3149_v60 = vld [vmem:[%s4893_s1 + $0x108] sm:$0xff] }
  0x2f   :  { %401 = vadd.xlane.f32.xlu0 %v400_v9  ;;  %404 = vadd.xlane.f32.xlu1 %v403_v10  ;;  %v330_v9 = vmul.f32 %v2905_v8, %v3144_v59  ;;  %v314_v10 = vmul.f32 %v2905_v8, %v3149_v60 }
  0x31   :  { %v445_v19 = vsel %vm345_vm0, %v314_v10, 0.0  ;;  %v3229_v10 = vld [vmem:[%s4893_s1 + $0x130] sm:$0xff] }
  0x33   :  { %407 = vadd.xlane.f32.xlu0 %v406_v17  ;;  %410 = vadd.xlane.f32.xlu1 %v409_v18  ;;  %v493_v17 = vsel %vm345_vm0, %v330_v9, 0.0  ;;  %v331_v18 = vmul.f32 %v2905_v8, %v3160_v11  ;;  %v3224_v9 = vld [vmem:[%s4893_s1 + $0x1b0] sm:$0xff] }
  0x35   :  { %v496_v29 = vsel %vm345_vm0, %v331_v18, 0.0  ;;  %v335_v18 = vmul.f32 %v2905_v8, %v3224_v9 }
  0x37   :  { %413 = vadd.xlane.f32.xlu0 %v412_v25  ;;  %416 = vadd.xlane.f32.xlu1 %v415_v26  ;;  %v3176_v25 = vld [vmem:[%s4893_s1 + $0x198] sm:$0xff] }
  0x38   :  { %v3181_v26 = vld [vmem:[%s4893_s1 + $0x118] sm:$0xff]  ;;  %v332_v30 = vmul.f32 %v2905_v8, %v3176_v25 }
  0x3b   :  { %419 = vadd.xlane.f32.xlu0 %v418_v35  ;;  %422 = vadd.xlane.f32.xlu1 %v421_v36  ;;  %v448_v35 = vsel %vm345_vm0, %v315_v20, 0.0  ;;  %v316_v36 = vmul.f32 %v2905_v8, %v3181_v26  ;;  %v319_v20 = vmul.f32 %v2905_v8, %v3229_v10 }
  0x3d   :  { %v451_v47 = vsel %vm345_vm0, %v316_v36, 0.0 }
  0x3f   :  { %425 = vadd.xlane.f32.xlu0 %v424_v43  ;;  %428 = vadd.xlane.f32.xlu1 %v427_v44  ;;  %v499_v43 = vsel %vm345_vm0, %v332_v30, 0.0  ;;  %v333_v44 = vmul.f32 %v2905_v8, %v3192_v37  ;;  %v3245_v30 = vld [vmem:[%s4893_s1 + $0x138] sm:$0xff] }
  0x41   :  { %v502_v55 = vsel %vm345_vm0, %v333_v44, 0.0  ;;  %v320_v44 = vmul.f32 %v2905_v8, %v3245_v30 }
  0x43   :  { %431 = vadd.xlane.f32.xlu0 %v430_v53  ;;  %434 = vadd.xlane.f32.xlu1 %v433_v54  ;;  %v3208_v53 = vld [vmem:[%s4893_s1 + $0x1a8] sm:$0xff] }
  0x44   :  { %v3213_v54 = vld [vmem:[%s4893_s1 + $0x128] sm:$0xff]  ;;  %v334_v56 = vmul.f32 %v2905_v8, %v3208_v53 }
  0x47   :  { %491 = vadd.xlane.f32.xlu0 %v490_v61  ;;  %443 = vadd.xlane.f32.xlu1 %v442_v62  ;;  %v454_v61 = vsel %vm345_vm0, %v317_v48, 0.0  ;;  %v318_v62 = vmul.f32 %v2905_v8, %v3213_v54  ;;  %v3261_v48 = vld [vmem:[%s4893_s1 + $0x140] sm:$0xff] }
  0x4b   :  { %494 = vadd.xlane.f32.xlu0 %v493_v17  ;;  %446 = vadd.xlane.f32.xlu1 %v445_v19  ;;  %v505_v17 = vsel %vm345_vm0, %v334_v56, 0.0  ;;  %v457_v19 = vsel %vm345_vm0, %v318_v62, 0.0  ;;  %v321_v62 = vmul.f32 %v2905_v8, %v3261_v48 }
  0x4f   :  { %497 = vadd.xlane.f32.xlu0 %v496_v29  ;;  %449 = vadd.xlane.f32.xlu1 %v448_v35  ;;  %v3240_v29 = vld [vmem:[%s4893_s1 + $0x1b8] sm:$0xff]  ;;  %v508_v35 = vsel %vm345_vm0, %v335_v18, 0.0  ;;  %v3277_v18 = vld [vmem:[%s4893_s1 + $0x148] sm:$0xff] }
  0x50   :  { %v336_v36 = vmul.f32 %v2905_v8, %v3240_v29 }
  0x53   :  { %500 = vadd.xlane.f32.xlu0 %v499_v43  ;;  %452 = vadd.xlane.f32.xlu1 %v451_v47  ;;  %v460_v43 = vsel %vm345_vm0, %v319_v20, 0.0  ;;  %v3256_v47 = vld [vmem:[%s4893_s1 + $0x1c0] sm:$0xff] }
  0x54   :  { %v337_v56 = vmul.f32 %v2905_v8, %v3256_v47 }
  0x57   :  { %503 = vadd.xlane.f32.xlu0 %v502_v55  ;;  %455 = vadd.xlane.f32.xlu1 %v454_v61  ;;  %v511_v55 = vsel %vm345_vm0, %v336_v36, 0.0  ;;  %v463_v61 = vsel %vm345_vm0, %v320_v44, 0.0  ;;  %v322_v36 = vmul.f32 %v2905_v8, %v3277_v18  ;;  %v3293_v44 = vld [vmem:[%s4893_s1 + $0x150] sm:$0xff] }
  0x58   :  { %4917 = vst [vmem:[#allocation10_spill] sm:$0xff] %v3293_v44 }
  0x5b   :  { %506 = vadd.xlane.f32.xlu0 %v505_v17  ;;  %458 = vadd.xlane.f32.xlu1 %v457_v19  ;;  %v3272_v17 = vld [vmem:[%s4893_s1 + $0x1c8] sm:$0xff]  ;;  %v514_v19 = vsel %vm345_vm0, %v337_v56, 0.0 }
  0x5c   :  { %v338_v20 = vmul.f32 %v2905_v8, %v3272_v17 }
  0x5f   :  { %509 = vadd.xlane.f32.xlu0 %v508_v35  ;;  %461 = vadd.xlane.f32.xlu1 %v460_v43  ;;  %v466_v35 = vsel %vm345_vm0, %v321_v62, 0.0  ;;  %v3288_v43 = vld [vmem:[%s4893_s1 + $0x1d0] sm:$0xff]  ;;  %v323_v62 = vmul.f32 %v2905_v8, %v3293_v44  ;;  %v3336_v44 = vld [vmem:[%s4893_s1 + $0x1e8] sm:$0xff] }
  0x60   :  { %4916 = vst [vmem:[#allocation9_spill] sm:$0xff] %v3288_v43  ;;  %v339_v56 = vmul.f32 %v2905_v8, %v3288_v43  ;;  %4922 = vst [vmem:[#allocation15_spill] sm:$0xff] %v3336_v44 }
  0x63   :  { %512 = vadd.xlane.f32.xlu0 %v511_v55  ;;  %464 = vadd.xlane.f32.xlu1 %v463_v61  ;;  %v517_v55 = vsel %vm345_vm0, %v338_v20, 0.0  ;;  %v469_v61 = vsel %vm345_vm0, %v322_v36, 0.0  ;;  %v520_v20 = vsel %vm345_vm0, %v339_v56, 0.0  ;;  %v472_v36 = vsel %vm345_vm0, %v323_v62, 0.0 }
  0x67   :  { %515 = vadd.xlane.f32.xlu0 %v514_v19  ;;  %467 = vadd.xlane.f32.xlu1 %v466_v35  ;;  %v3309_v19 = vld [vmem:[%s4893_s1 + $0x158] sm:$0xff]  ;;  %v340_v35 = vmul.f32 %v2905_v8, %v3304_v1 }
  0x68   :  { %4919 = vst [vmem:[#allocation12_spill] sm:$0xff] %v3309_v19  ;;  %v324_v2 = vmul.f32 %v2905_v8, %v3309_v19  ;;  %v3384_v1 = vld [vmem:[%s4893_s1 + $0x1f8] sm:$0xff] }
  0x69   :  { %v523_v56 = vsel %vm345_vm0, %v340_v35, 0.0  ;;  %4926 = vst [vmem:[#allocation19_spill] sm:$0xff] %v3384_v1 }
  0x6a   :  { %v475_v62 = vsel %vm345_vm0, %v324_v2, 0.0  ;;  %v342_v2 = vmul.f32 %v2905_v8, %v3336_v44  ;;  %v3368_v44 = vld [vmem:[%s4893_s1 + $0x170] sm:$0xff] }
  0x6b   :  { %518 = vadd.xlane.f32.xlu0 %v517_v55  ;;  %470 = vadd.xlane.f32.xlu1 %v469_v61  ;;  %v3325_v55 = vld [vmem:[%s4893_s1 + $0x160] sm:$0xff]  ;;  %v341_v61 = vmul.f32 %v2905_v8, %v3320_v0  ;;  %v3352_v0 = vld [vmem:[%s4893_s1 + $0xf0] sm:$0xff]  ;;  %4925 = vst [vmem:[#allocation18_spill] sm:$0xff] %v3368_v44 }
  0x6c   :  { %4921 = vst [vmem:[#allocation14_spill] sm:$0xff] %v3325_v55  ;;  %v325_v19 = vmul.f32 %v2905_v8, %v3325_v55 }
  0x6d   :  { %v526_v35 = vsel %vm345_vm0, %v341_v61, 0.0  ;;  %v529_v61 = vsel %vm345_vm0, %v342_v2, 0.0 }
  0x6f   :  { %521 = vadd.xlane.f32.xlu0 %v520_v20  ;;  %473 = vadd.xlane.f32.xlu1 %v472_v36  ;;  %v3341_v20 = vld [vmem:[%s4893_s1 + $0x168] sm:$0xff]  ;;  %v478_v36 = vsel %vm345_vm0, %v325_v19, 0.0  ;;  %v311_v19 = vmul.f32 %v2905_v8, %v3352_v0 }
  0x70   :  { %4923 = vst [vmem:[#allocation16_spill] sm:$0xff] %v3341_v20  ;;  %v326_v55 = vmul.f32 %v2905_v8, %v3341_v20 }
  0x71   :  { %v436_v2 = vsel %vm345_vm0, %v311_v19, 0.0 }
  0x73   :  { %524 = vadd.xlane.f32.xlu0 %v523_v56  ;;  %476 = vadd.xlane.f32.xlu1 %v475_v62  ;;  %v3357_v56 = vld [vmem:[%s4893_s1 + $0x1f0] sm:$0xff]  ;;  %v481_v62 = vsel %vm345_vm0, %v326_v55, 0.0  ;;  %v327_v55 = vmul.f32 %v2905_v8, %v3368_v44 }
  0x74   :  { %4924 = vst [vmem:[#allocation17_spill] sm:$0xff] %v3357_v56  ;;  %v343_v20 = vmul.f32 %v2905_v8, %v3357_v56 }
  0x75   :  { %v484_v19 = vsel %vm345_vm0, %v327_v55, 0.0 }
  0x77   :  { %527 = vadd.xlane.f32.xlu0 %v526_v35  ;;  %479 = vadd.xlane.f32.xlu1 %v478_v36  ;;  %v3373_v35 = vld [vmem:[%s4893_s1 + $0xf8] sm:$0xff]  ;;  %v532_v36 = vsel %vm345_vm0, %v343_v20, 0.0  ;;  %v344_v20 = vmul.f32 %v2905_v8, %v3384_v1 }
  0x78   :  { %v312_v56 = vmul.f32 %v2905_v8, %v3373_v35 }
  0x79   :  { %v535_v43 = vsel %vm345_vm0, %v344_v20, 0.0 }
  0x7b   :  { %530 = vadd.xlane.f32.xlu0 %v529_v61  ;;  %482 = vadd.xlane.f32.xlu1 %v481_v62  ;;  %v3389_v61 = vld [vmem:[%s4893_s1 + $0x178] sm:$0xff]  ;;  %v439_v62 = vsel %vm345_vm0, %v312_v56, 0.0  ;;  %v2417_v56 = vpack.c.bf16 %v3016_v51, %v3021_v52 }
  0x7c   :  { %4927 = vst [vmem:[#allocation20_spill] sm:$0xff] %v3389_v61  ;;  %v328_v44 = vmul.f32 %v2905_v8, %v3389_v61  ;;  %v2429_v61 = vpack.c.bf16 %v3053_v4, %v3048_v63 }
  0x7d   :  { %2419 = vmatprep.subr.msk.bf16.mxu0 %vm3409_vm1, %v2417_v56  ;;  %v2426_v56 = vpack.c.bf16 %v2897_v6, %v2886_v3 }
  0x7e   :  { %v487_v45 = vsel %vm345_vm0, %v328_v44, 0.0  ;;  %v3424_v44 = vld [vmem:[%s4892_s0] sm:$0xff] }
  0x7f   :  { %437 = vadd.xlane.f32.xlu0 %v436_v2  ;;  %533 = vadd.xlane.f32.xlu1 %v532_v36 }
  0x83   :  { %485 = vadd.xlane.f32.xlu0 %v484_v19  ;;  %440 = vadd.xlane.f32.xlu1 %v439_v62  ;;  %v2423_v62 = vpack.c.bf16 %v3037_v58, %v3032_v57 }
  0x87   :  { %536 = vadd.xlane.f32.xlu0 %v535_v43  ;;  %488 = vadd.xlane.f32.xlu1 %v487_v45  ;;  %v2420_v45 = vpack.c.bf16 %v2902_v7, %v2892_v5  ;;  %v2841_v43 = vmov 1.0  }
  0x88   :  { %82 = vst.msk [vmem:[#allocation2] sm:$0xff] %vm81_vm2, %v2841_v43  ;;  %83 = vst.msk [vmem:[#allocation2 + $0x8] sm:$0xff] %vm81_vm2, %v2841_v43 }
  0x89   :  { %2422 = vmatpush3.bf16.xpose.msk.msra.mxu0 %vm3409_vm1, %v2420_v45  ;;  %84 = vst.msk [vmem:[#allocation2 + $0x10] sm:$0xff] %vm81_vm2, %v2841_v43  ;;  %85 = vst.msk [vmem:[#allocation2 + $0x18] sm:$0xff] %vm81_vm2, %v2841_v43 }
  0x8a   :  { %86 = vst.msk [vmem:[#allocation2 + $0x20] sm:$0xff] %vm81_vm2, %v2841_v43  ;;  %87 = vst.msk [vmem:[#allocation2 + $0x28] sm:$0xff] %vm81_vm2, %v2841_v43  ;;  %2425 = vmatprep.subr.msk.bf16.mxu0 %vm3409_vm1, %v2423_v62 }
  0x8b   :  { %88 = vst.msk [vmem:[#allocation2 + $0x30] sm:$0xff] %vm81_vm2, %v2841_v43  ;;  %89 = vst.msk [vmem:[#allocation2 + $0x38] sm:$0xff] %vm81_vm2, %v2841_v43 }
  0x8c   :  { %90 = vst.msk [vmem:[#allocation2 + $0x40] sm:$0xff] %vm81_vm2, %v2841_v43  ;;  %91 = vst.msk [vmem:[#allocation2 + $0x48] sm:$0xff] %vm81_vm2, %v2841_v43 }
  0x8d   :  { %92 = vst.msk [vmem:[#allocation2 + $0x50] sm:$0xff] %vm81_vm2, %v2841_v43  ;;  %93 = vst.msk [vmem:[#allocation2 + $0x58] sm:$0xff] %vm81_vm2, %v2841_v43 }
  0x8e   :  { %94 = vst.msk [vmem:[#allocation2 + $0x60] sm:$0xff] %vm81_vm2, %v2841_v43  ;;  %95 = vst.msk [vmem:[#allocation2 + $0x68] sm:$0xff] %vm81_vm2, %v2841_v43 }
  0x8f   :  { %96 = vst.msk [vmem:[#allocation2 + $0x70] sm:$0xff] %vm81_vm2, %v2841_v43  ;;  %97 = vst.msk [vmem:[#allocation2 + $0x78] sm:$0xff] %vm81_vm2, %v2841_v43 }
  0x90   :  { %98 = vst.msk [vmem:[#allocation2 + $0x80] sm:$0xff] %vm81_vm2, %v2841_v43  ;;  %99 = vst.msk [vmem:[#allocation2 + $0x88] sm:$0xff] %vm81_vm2, %v2841_v43 }
  0x91   :  { %100 = vst.msk [vmem:[#allocation2 + $0x90] sm:$0xff] %vm81_vm2, %v2841_v43  ;;  %101 = vst.msk [vmem:[#allocation2 + $0x98] sm:$0xff] %vm81_vm2, %v2841_v43  ;;  %2428 = vmatpush3.bf16.xpose.msk.msra.mxu0 %vm3409_vm1, %v2426_v56  ;;  %v162_v56 = vld [vmem:[%s4892_s0 + $0x80] sm:$0xff] }
  0x92   :  { %102 = vst.msk [vmem:[#allocation2 + $0xa0] sm:$0xff] %vm81_vm2, %v2841_v43  ;;  %103 = vst.msk [vmem:[#allocation2 + $0xa8] sm:$0xff] %vm81_vm2, %v2841_v43  ;;  %2431 = vmatprep.subr.msk.bf16.mxu0 %vm3409_vm1, %v2429_v61  ;;  %v163_v61 = vld [vmem:[%s4892_s0 + $0x88] sm:$0xff] }
  0x93   :  { %104 = vst.msk [vmem:[#allocation2 + $0xb0] sm:$0xff] %vm81_vm2, %v2841_v43  ;;  %105 = vst.msk [vmem:[#allocation2 + $0xb8] sm:$0xff] %vm81_vm2, %v2841_v43 }
  0x94   :  { %106 = vst.msk [vmem:[#allocation2 + $0xc0] sm:$0xff] %vm81_vm2, %v2841_v43  ;;  %107 = vst.msk [vmem:[#allocation2 + $0xc8] sm:$0xff] %vm81_vm2, %v2841_v43 }
  0x95   :  { %108 = vst.msk [vmem:[#allocation2 + $0xd0] sm:$0xff] %vm81_vm2, %v2841_v43  ;;  %109 = vst.msk [vmem:[#allocation2 + $0xd8] sm:$0xff] %vm81_vm2, %v2841_v43 }
  0x96   :  { %110 = vst.msk [vmem:[#allocation2 + $0xe0] sm:$0xff] %vm81_vm2, %v2841_v43  ;;  %111 = vst.msk [vmem:[#allocation2 + $0xe8] sm:$0xff] %vm81_vm2, %v2841_v43 }
  0x97   :  { %112 = vst.msk [vmem:[#allocation2 + $0xf0] sm:$0xff] %vm81_vm2, %v2841_v43  ;;  %113 = vst.msk [vmem:[#allocation2 + $0xf8] sm:$0xff] %vm81_vm2, %v2841_v43 }
  0x98   :  { %v3399_v2 = vpop.xlane.xlu1 %353  ;;  %v3401_v36 = vpop.xlane.xlu0 %347  ;;  %1453 = vrot.lane.b32.xlu1 %v3128_v49, %s2840_s15  ;;  %114 = vst.msk [vmem:[#allocation2 + $0x100] sm:$0xff] %vm81_vm2, %v2841_v43  ;;  %115 = vst.msk [vmem:[#allocation2 + $0x108] sm:$0xff] %vm81_vm2, %v2841_v43 }
  0x99   :  { %116 = vst.msk [vmem:[#allocation2 + $0x110] sm:$0xff] %vm81_vm2, %v2841_v43  ;;  %117 = vst.msk [vmem:[#allocation2 + $0x118] sm:$0xff] %vm81_vm2, %v2841_v43  ;;  %v538_v20 = vmul.f32 %v3401_v36, %v2892_v5 }
  0x9a   :  { %118 = vst.msk [vmem:[#allocation2 + $0x120] sm:$0xff] %vm81_vm2, %v2841_v43  ;;  %119 = vst.msk [vmem:[#allocation2 + $0x128] sm:$0xff] %vm81_vm2, %v2841_v43 }
  0x9b   :  { %120 = vst.msk [vmem:[#allocation2 + $0x130] sm:$0xff] %vm81_vm2, %v2841_v43  ;;  %121 = vst.msk [vmem:[#allocation2 + $0x138] sm:$0xff] %vm81_vm2, %v2841_v43 }
  0x9c   :  { %122 = vst.msk [vmem:[#allocation2 + $0x140] sm:$0xff] %vm81_vm2, %v2841_v43  ;;  %123 = vst.msk [vmem:[#allocation2 + $0x148] sm:$0xff] %vm81_vm2, %v2841_v43  ;;  %v3552_v55 = vpop.xlane.xlu1 %356  ;;  %v3554_v19 = vpop.xlane.xlu0 %350 }
  0x9d   :  { %124 = vst.msk [vmem:[#allocation2 + $0x150] sm:$0xff] %vm81_vm2, %v2841_v43  ;;  %125 = vst.msk [vmem:[#allocation2 + $0x158] sm:$0xff] %vm81_vm2, %v2841_v43  ;;  %1389 = vrot.lane.b32.xlu0 %v3021_v52, %s2840_s15 }
  0x9e   :  { %126 = vst.msk [vmem:[#allocation2 + $0x160] sm:$0xff] %vm81_vm2, %v2841_v43  ;;  %127 = vst.msk [vmem:[#allocation2 + $0x168] sm:$0xff] %vm81_vm2, %v2841_v43 }
  0x9f   :  { %128 = vst.msk [vmem:[#allocation2 + $0x170] sm:$0xff] %vm81_vm2, %v2841_v43  ;;  %129 = vst.msk [vmem:[#allocation2 + $0x178] sm:$0xff] %vm81_vm2, %v2841_v43 }
  0xa0   :  { %130 = vst.msk [vmem:[#allocation2 + $0x180] sm:$0xff] %vm81_vm2, %v2841_v43  ;;  %131 = vst.msk [vmem:[#allocation2 + $0x188] sm:$0xff] %vm81_vm2, %v2841_v43  ;;  %v3566_v45 = vpop.xlane.xlu1 %362 }
  0xa1   :  { %132 = vst.msk [vmem:[#allocation2 + $0x190] sm:$0xff] %vm81_vm2, %v2841_v43  ;;  %133 = vst.msk [vmem:[#allocation2 + $0x198] sm:$0xff] %vm81_vm2, %v2841_v43  ;;  %1100 = vrot.lane.b32.xlu0 %v538_v20, %s2842_s18 }
  0xa2   :  { %134 = vst.msk [vmem:[#allocation2 + $0x1a0] sm:$0xff] %vm81_vm2, %v2841_v43  ;;  %135 = vst.msk [vmem:[#allocation2 + $0x1a8] sm:$0xff] %vm81_vm2, %v2841_v43 }
  0xa3   :  { %136 = vst.msk [vmem:[#allocation2 + $0x1b0] sm:$0xff] %vm81_vm2, %v2841_v43  ;;  %137 = vst.msk [vmem:[#allocation2 + $0x1b8] sm:$0xff] %vm81_vm2, %v2841_v43 }
  0xa4   :  { %138 = vst.msk [vmem:[#allocation2 + $0x1c0] sm:$0xff] %vm81_vm2, %v2841_v43  ;;  %139 = vst.msk [vmem:[#allocation2 + $0x1c8] sm:$0xff] %vm81_vm2, %v2841_v43  ;;  %v3575_v36 = vpop.xlane.xlu1 %368 }
  0xa5   :  { %140 = vst.msk [vmem:[#allocation2 + $0x1d0] sm:$0xff] %vm81_vm2, %v2841_v43  ;;  %141 = vst.msk [vmem:[#allocation2 + $0x1d8] sm:$0xff] %vm81_vm2, %v2841_v43 }
  0xa6   :  { %142 = vst.msk [vmem:[#allocation2 + $0x1e0] sm:$0xff] %vm81_vm2, %v2841_v43  ;;  %143 = vst.msk [vmem:[#allocation2 + $0x1e8] sm:$0xff] %vm81_vm2, %v2841_v43 }
  0xa7   :  { %144 = vst.msk [vmem:[#allocation2 + $0x1f0] sm:$0xff] %vm81_vm2, %v2841_v43  ;;  %145 = vst.msk [vmem:[#allocation2 + $0x1f8] sm:$0xff] %vm81_vm2, %v2841_v43  ;;  %v3568_v43 = vpop.xlane.xlu0 %359 }
  0xa8   :  { %972 = vst.msk [vmem:[#allocation2] sm:$0xff] %vm345_vm0, %v3424_v44  ;;  %4930 = vst [vmem:[#allocation21_spill] sm:$0xff] %v3566_v45  ;;  %v2432_v45 = vpack.c.bf16 %v2918_v13, %v2923_v14  ;;  %v2465_v13 = vpack.c.bf16 %v3144_v59, %v3128_v49 }
  0xa9   :  { %4931 = vst [vmem:[#allocation22_spill] sm:$0xff] %v3568_v43  ;;  %v3583_v43 = vpop.xlane.xlu1 %374  ;;  %988 = vst.msk [vmem:[#allocation2 + $0x80] sm:$0xff] %vm345_vm0, %v162_v56  ;;  %v2435_v56 = vpack.c.bf16 %v3069_v16, %v3064_v15 }
  0xaa   :  { %4932 = vst [vmem:[#allocation23_spill] sm:$0xff] %v3583_v43  ;;  %2434 = vmatpush3.bf16.xpose.msk.msra.mxu0 %vm3409_vm1, %v2432_v45  ;;  %v2468_v43 = vpack.c.bf16 %v3149_v60, %v3133_v50  ;;  %2467 = vmatprep.subr.msk.bf16.mxu1 %vm3409_vm1, %v2465_v13  ;;  %989 = vst.msk [vmem:[#allocation2 + $0x88] sm:$0xff] %vm345_vm0, %v163_v61  ;;  %v147_v61 = vld [vmem:[%s4892_s0 + $0x8] sm:$0xff] }
  0xab   :  { %v3577_v44 = vpop.xlane.xlu0 %365  ;;  %2437 = vmatprep.subr.msk.bf16.mxu0 %vm3409_vm1, %v2435_v56  ;;  %973 = vst.msk [vmem:[#allocation2 + $0x8] sm:$0xff] %vm345_vm0, %v147_v61  ;;  %v2441_v56 = vpack.c.bf16 %v3085_v24, %v3080_v23  ;;  %v2444_v61 = vpack.c.bf16 %v2952_v27, %v2957_v28  ;;  %v2477_v27 = vpack.c.bf16 %v3208_v53, %v3192_v37 }
  0xac   :  { %2470 = vmatpush3.bf16.xpose.msk.msra.mxu1 %vm3409_vm1, %v2468_v43  ;;  %v2480_v28 = vpack.c.bf16 %v3213_v54, %v3197_v38 }
  0xad   :  { %v3591_v20 = vpop.xlane.xlu1 %380 }
  0xae   :  { %4933 = vst [vmem:[#allocation24_spill] sm:$0xff] %v3591_v20 }
  0xaf   :  { %v3585_v1 = vpop.xlane.xlu0 %371 }
  0xb1   :  { %v3610_v45 = vpop.xlane.xlu1 %386 }
  0xb2   :  { %4935 = vst [vmem:[#allocation26_spill] sm:$0xff] %v3610_v45  ;;  %v2471_v45 = vpack.c.bf16 %v3176_v25, %v3160_v11 }
  0xb3   :  { %v3593_v62 = vpop.xlane.xlu0 %377 }
  0xb4   :  { %4934 = vst [vmem:[#allocation25_spill] sm:$0xff] %v3593_v62  ;;  %v2438_v62 = vpack.c.bf16 %v2936_v21, %v2941_v22  ;;  %v2474_v21 = vpack.c.bf16 %v3181_v26, %v3165_v12  ;;  %2473 = vmatprep.subr.msk.bf16.mxu1 %vm3409_vm1, %v2471_v45 }
  0xb5   :  { %v3623_v13 = vpop.xlane.xlu1 %392 }
  0xb6   :  { %2440 = vmatpush3.bf16.xpose.msk.msra.mxu0 %vm3409_vm1, %v2438_v62  ;;  %4936 = vst [vmem:[#allocation27_spill] sm:$0xff] %v3623_v13  ;;  %2476 = vmatpush3.bf16.xpose.msk.msra.mxu1 %vm3409_vm1, %v2474_v21 }
  0xb7   :  { %v3612_v20 = vpop.xlane.xlu0 %383  ;;  %2443 = vmatprep.subr.msk.bf16.mxu0 %vm3409_vm1, %v2441_v56  ;;  %2479 = vmatprep.subr.msk.bf16.mxu1 %vm3409_vm1, %v2477_v27  ;;  %v194_v56 = vld [vmem:[%s4892_s0 + $0x180] sm:$0xff] }
  0xb8   :  { %1020 = vst.msk [vmem:[#allocation2 + $0x180] sm:$0xff] %vm345_vm0, %v194_v56  ;;  %v4942_v56 = vld [vmem:[#allocation12_spill] sm:$0xff] }
  0xb9   :  { %v399_v22 = vpop.xlane.xlu1 %398 }
  0xba   :  { %v555_v13 = vmul.f32 %v399_v22, %v3016_v51  ;;  %v2450_v22 = vpack.c.bf16 %v2968_v33, %v2973_v34  ;;  %v2486_v33 = vpack.c.bf16 %v3245_v30, %v3229_v10 }
  0xbb   :  { %v3625_v43 = vpop.xlane.xlu0 %389 }
  0xbc   :  { %4937 = vst [vmem:[#allocation28_spill] sm:$0xff] %v3625_v43  ;;  %1134 = vrot.lane.b32.xlu0 %v555_v13, %s2842_s18  ;;  %v2447_v13 = vpack.c.bf16 %v3101_v32, %v3096_v31  ;;  %v148_v31 = vld [vmem:[%s4892_s0 + $0x10] sm:$0xff]  ;;  %v2483_v32 = vpack.c.bf16 %v3240_v29, %v3224_v9 }
  0xbd   :  { %v3649_v21 = vpop.xlane.xlu1 %404  ;;  %974 = vst.msk [vmem:[#allocation2 + $0x10] sm:$0xff] %vm345_vm0, %v148_v31 }
  0xbe   :  { %2446 = vmatpush3.bf16.xpose.msk.msra.mxu0 %vm3409_vm1, %v2444_v61  ;;  %2482 = vmatpush3.bf16.xpose.msk.msra.mxu1 %vm3409_vm1, %v2480_v28  ;;  %v2453_v61 = vpack.c.bf16 %v3117_v42, %v3112_v41  ;;  %v178_v41 = vld [vmem:[%s4892_s0 + $0x100] sm:$0xff]  ;;  %v2492_v42 = vpack.c.bf16 %v3277_v18, %v3261_v48  ;;  %v2459_v48 = vpack.c.bf16 %v3373_v35, %v3352_v0  ;;  %v149_v0 = vld [vmem:[%s4892_s0 + $0x18] sm:$0xff] }
  0xbf   :  { %v396_v62 = vpop.xlane.xlu0 %395  ;;  %2449 = vmatprep.subr.msk.bf16.mxu0 %vm3409_vm1, %v2447_v13  ;;  %2485 = vmatprep.subr.msk.bf16.mxu1 %vm3409_vm1, %v2483_v32  ;;  %1004 = vst.msk [vmem:[#allocation2 + $0x100] sm:$0xff] %vm345_vm0, %v178_v41  ;;  %v540_v18 = vmul.f32 %v3399_v2, %v2886_v3  ;;  %v4939_v35 = vld [vmem:[#allocation9_spill] sm:$0xff]  ;;  %v4940_v2 = vld [vmem:[#allocation11_spill] sm:$0xff]  ;;  %975 = vst.msk [vmem:[#allocation2 + $0x18] sm:$0xff] %vm345_vm0, %v149_v0 }
  0xc0   :  { %v554_v43 = vmul.f32 %v396_v62, %v3021_v52  ;;  %v164_v52 = vld [vmem:[%s4892_s0 + $0x90] sm:$0xff]  ;;  %1357 = vrot.lane.b32.xlu0 %v2892_v5, %s2840_s15  ;;  %v2495_v32 = vpack.c.bf16 %v4940_v2, %v4939_v35 }
  0xc1   :  { %990 = vst.msk [vmem:[#allocation2 + $0x90] sm:$0xff] %vm345_vm0, %v164_v52  ;;  %v3669_v24 = vpop.xlane.xlu1 %410  ;;  %v196_v2 = vld [vmem:[%s4892_s0 + $0x190] sm:$0xff] }
  0xc2   :  { %1132 = vrot.lane.b32.xlu1 %v554_v43, %s2842_s18  ;;  %v539_v43 = vmul.f32 %v3554_v19, %v2902_v7  ;;  %1022 = vst.msk [vmem:[#allocation2 + $0x190] sm:$0xff] %vm345_vm0, %v196_v2  ;;  %v151_v2 = vld [vmem:[%s4892_s0 + $0x28] sm:$0xff] }
  0xc3   :  { %v402_v45 = vpop.xlane.xlu0 %401  ;;  %977 = vst.msk [vmem:[#allocation2 + $0x28] sm:$0xff] %vm345_vm0, %v151_v2  ;;  %v153_v2 = vld [vmem:[%s4892_s0 + $0x38] sm:$0xff] }
  0xc4   :  { %1102 = vrot.lane.b32.xlu0 %v539_v43, %s2842_s18  ;;  %v556_v52 = vmul.f32 %v402_v45, %v3032_v57  ;;  %979 = vst.msk [vmem:[#allocation2 + $0x38] sm:$0xff] %vm345_vm0, %v153_v2  ;;  %v172_v2 = vld [vmem:[%s4892_s0 + $0xd0] sm:$0xff] }
  0xc5   :  { %v3682_v62 = vpop.xlane.xlu1 %416  ;;  %998 = vst.msk [vmem:[#allocation2 + $0xd0] sm:$0xff] %vm345_vm0, %v172_v2 }
  0xc6   :  { %2452 = vmatpush3.bf16.xpose.msk.msra.mxu0 %vm3409_vm1, %v2450_v22  ;;  %2488 = vmatpush3.bf16.xpose.msk.msra.mxu1 %vm3409_vm1, %v2486_v33 }
  0xc7   :  { %v3667_v23 = vpop.xlane.xlu0 %407  ;;  %2455 = vmatprep.subr.msk.bf16.mxu0 %vm3409_vm1, %v2453_v61 }
  0xc8   :  { %1391 = vrot.lane.b32.xlu0 %v3016_v51, %s2840_s15  ;;  %v2456_v51 = vpack.c.bf16 %v2984_v39, %v2989_v40  ;;  %v165_v39 = vld [vmem:[%s4892_s0 + $0x98] sm:$0xff]  ;;  %v2489_v40 = vpack.c.bf16 %v3272_v17, %v3256_v47  ;;  %v195_v17 = vld [vmem:[%s4892_s0 + $0x188] sm:$0xff] }
  0xc9   :  { %v3702_v19 = vpop.xlane.xlu1 %422  ;;  %991 = vst.msk [vmem:[#allocation2 + $0x98] sm:$0xff] %vm345_vm0, %v165_v39  ;;  %1021 = vst.msk [vmem:[#allocation2 + $0x188] sm:$0xff] %vm345_vm0, %v195_v17  ;;  %v557_v39 = vmul.f32 %v3649_v21, %v3037_v58  ;;  %v166_v17 = vld [vmem:[%s4892_s0 + $0xa0] sm:$0xff] }
  0xca   :  { %2491 = vmatprep.subr.msk.bf16.mxu1 %vm3409_vm1, %v2489_v40  ;;  %992 = vst.msk [vmem:[#allocation2 + $0xa0] sm:$0xff] %vm345_vm0, %v166_v17  ;;  %v4946_v21 = vld [vmem:[#allocation14_spill] sm:$0xff]  ;;  %v558_v17 = vmul.f32 %v3667_v23, %v3048_v63 }
  0xcb   :  { %v3680_v5 = vpop.xlane.xlu0 %413 }
  0xcc   :  { %1136 = vrot.lane.b32.xlu0 %v556_v52, %s2842_s18 }
  0xcd   :  { %v3718_v28 = vpop.xlane.xlu1 %428 }
  0xce   :  { %2458 = vmatpush3.bf16.xpose.msk.msra.mxu0 %vm3409_vm1, %v2456_v51  ;;  %2494 = vmatpush3.bf16.xpose.msk.msra.mxu1 %vm3409_vm1, %v2492_v42 }
  0xcf   :  { %v3700_v34 = vpop.xlane.xlu0 %419  ;;  %2461 = vmatprep.subr.msk.bf16.mxu0 %vm3409_vm1, %v2459_v48  ;;  %2497 = vmatprep.subr.msk.bf16.mxu1 %vm3409_vm1, %v2495_v32  ;;  %v4943_v48 = vld [vmem:[#allocation13_spill] sm:$0xff]  ;;  %v541_v32 = vmul.f32 %v3552_v55, %v2897_v6 }
  0xd0   :  { %1359 = vrot.lane.b32.xlu0 %v2902_v7, %s2840_s15  ;;  %v4938_v7 = vld [vmem:[#allocation8_spill] sm:$0xff] }
  0xd1   :  { %v3742_v13 = vpop.xlane.xlu1 %434  ;;  %v2462_v43 = vpack.c.bf16 %v4938_v7, %v3005_v46  ;;  %v4941_v46 = vld [vmem:[#allocation10_spill] sm:$0xff] }
  0xd2   :  { %v2498_v61 = vpack.c.bf16 %v4942_v56, %v4941_v46  ;;  %v150_v56 = vld [vmem:[%s4892_s0 + $0x20] sm:$0xff] }
  0xd3   :  { %v3716_v27 = vpop.xlane.xlu0 %425  ;;  %976 = vst.msk [vmem:[#allocation2 + $0x20] sm:$0xff] %vm345_vm0, %v150_v56  ;;  %v168_v56 = vld [vmem:[%s4892_s0 + $0xb0] sm:$0xff] }
  0xd4   :  { %1104 = vrot.lane.b32.xlu0 %v540_v18, %s2842_s18  ;;  %v4944_v18 = vld [vmem:[#allocation15_spill] sm:$0xff]  ;;  %994 = vst.msk [vmem:[#allocation2 + $0xb0] sm:$0xff] %vm345_vm0, %v168_v56  ;;  %v170_v56 = vld [vmem:[%s4892_s0 + $0xc0] sm:$0xff] }
  0xd5   :  { %v444_v31 = vpop.xlane.xlu1 %443  ;;  %v2501_v7 = vpack.c.bf16 %v4944_v18, %v4943_v48  ;;  %v167_v18 = vld [vmem:[%s4892_s0 + $0xa8] sm:$0xff]  ;;  %996 = vst.msk [vmem:[#allocation2 + $0xc0] sm:$0xff] %vm345_vm0, %v170_v56 }
  0xd6   :  { %2464 = vmatpush3.bf16.xpose.msk.msra.mxu0 %vm3409_vm1, %v2462_v43  ;;  %v570_v52 = vmul.f32 %v444_v31, %v3133_v50  ;;  %2500 = vmatpush3.bf16.xpose.msk.msra.mxu1 %vm3409_vm1, %v2498_v61  ;;  %v4945_v43 = vld [vmem:[#allocation6_spill] sm:$0xff]  ;;  %v4948_v61 = vld [vmem:[#allocation17_spill] sm:$0xff]  ;;  %993 = vst.msk [vmem:[#allocation2 + $0xa8] sm:$0xff] %vm345_vm0, %v167_v18 }
  0xd7   :  { %v3740_v45 = vpop.xlane.xlu0 %431  ;;  %2503 = vmatprep.subr.msk.bf16.mxu1 %vm3409_vm1, %v2501_v7  ;;  %v197_v7 = vld [vmem:[%s4892_s0 + $0x198] sm:$0xff] }
  0xd8   :  { %1393 = vrot.lane.b32.xlu0 %v3032_v57, %s2840_s15  ;;  %1023 = vst.msk [vmem:[#allocation2 + $0x198] sm:$0xff] %vm345_vm0, %v197_v7  ;;  %v169_v7 = vld [vmem:[%s4892_s0 + $0xb8] sm:$0xff] }
  0xd9   :  { %v447_v41 = vpop.xlane.xlu1 %446  ;;  %995 = vst.msk [vmem:[#allocation2 + $0xb8] sm:$0xff] %vm345_vm0, %v169_v7  ;;  %v155_v7 = vld [vmem:[%s4892_s0 + $0x48] sm:$0xff] }
  0xda   :  { %981 = vst.msk [vmem:[#allocation2 + $0x48] sm:$0xff] %vm345_vm0, %v155_v7  ;;  %v2790_v7 = vld [vmem:[%s4893_s1 + $0x140] sm:$0xff] }
  0xdb   :  { %v492_v22 = vpop.xlane.xlu0 %491 }
  0xdc   :  { %v586_v33 = vmul.f32 %v492_v22, %v3128_v49  ;;  %v179_v49 = vld [vmem:[%s4892_s0 + $0x108] sm:$0xff]  ;;  %1138 = vrot.lane.b32.xlu0 %v557_v39, %s2842_s18  ;;  %v4947_v22 = vld [vmem:[#allocation16_spill] sm:$0xff] }
  0xdd   :  { %1005 = vst.msk [vmem:[#allocation2 + $0x108] sm:$0xff] %vm345_vm0, %v179_v49  ;;  %v450_v42 = vpop.xlane.xlu1 %449  ;;  %2240 = vmatmul.mubr.msk.f32.vlgmr.msra.gmra.mrb[0].mxu0 %vm345_vm0, %v4945_v43  ;;  %v2504_v31 = vpack.c.bf16 %v4947_v22, %v4946_v21  ;;  %v4951_v49 = vld [vmem:[#allocation20_spill] sm:$0xff]  ;;  %v4952_v43 = vld [vmem:[#allocation22_spill] sm:$0xff] }
  0xde   :  { %1196 = vrot.lane.b32.xlu1 %v586_v33, %s2842_s18  ;;  %v542_v21 = vmul.f32 %v4952_v43, %v2923_v14  ;;  %v2780_v43 = vld [vmem:[%s4893_s1 + $0x30] sm:$0xff] }
  0xdf   :  { %v495_v51 = vpop.xlane.xlu0 %494  ;;  %2506 = vmatpush3.bf16.xpose.msk.msra.mxu1 %vm3409_vm1, %v2504_v31 }
  0xe0   :  { %v587_v57 = vmul.f32 %v495_v51, %v3144_v59  ;;  %1361 = vrot.lane.b32.xlu0 %v2886_v3, %s2840_s15  ;;  %v571_v3 = vmul.f32 %v447_v41, %v3149_v60  ;;  %v4950_v51 = vld [vmem:[#allocation18_spill] sm:$0xff] }
  0xe1   :  { %v3800_v35 = vpop.xlane.xlu1 %452  ;;  %v2510_v39 = vpack.c.bf16 %v4951_v49, %v4950_v51 }
  0xe2   :  { %1164 = vrot.lane.b32.xlu1 %v570_v52, %s2842_s18  ;;  %v4949_v52 = vld [vmem:[#allocation19_spill] sm:$0xff]  ;;  %v573_v49 = vmul.f32 %v3800_v35, %v3181_v26 }
  0xe3   :  { %v498_v40 = vpop.xlane.xlu0 %497  ;;  %v2507_v55 = vpack.c.bf16 %v4949_v52, %v4948_v61  ;;  %v2779_v52 = vld [vmem:[%s4893_s1 + $0x28] sm:$0xff] }
  0xe4   :  { %1106 = vrot.lane.b32.xlu0 %v541_v32, %s2842_s18  ;;  %v559_v32 = vmul.f32 %v3669_v24, %v3053_v4  ;;  %v2778_v24 = vld [vmem:[%s4893_s1 + $0x20] sm:$0xff] }
  0xe5   :  { %v3816_v46 = vpop.xlane.xlu1 %455  ;;  %2509 = vmatprep.subr.msk.bf16.mxu1 %vm3409_vm1, %v2507_v55  ;;  %v4953_v55 = vld [vmem:[#allocation21_spill] sm:$0xff] }
  0xe6   :  { %1198 = vrot.lane.b32.xlu1 %v587_v57, %s2842_s18  ;;  %v180_v57 = vld [vmem:[%s4892_s0 + $0x110] sm:$0xff]  ;;  %v543_v51 = vmul.f32 %v2779_v52, %v4953_v55 }
  0xe7   :  { %v501_v0 = vpop.xlane.xlu0 %500  ;;  %2512 = vmatpush3.bf16.xpose.msk.msra.mxu1 %vm3409_vm1, %v2510_v39  ;;  %1006 = vst.msk [vmem:[#allocation2 + $0x110] sm:$0xff] %vm345_vm0, %v180_v57 }
  0xe8   :  { %1395 = vrot.lane.b32.xlu0 %v3037_v58, %s2840_s15  ;;  %v588_v58 = vmul.f32 %v498_v40, %v3160_v11 }
  0xe9   :  { %v3833_v41 = vpop.xlane.xlu1 %458 }
  0xea   :  { %1421 = vrot.lane.b32.xlu1 %v3133_v50, %s2840_s15 }
  0xeb   :  { %v3814_v33 = vpop.xlane.xlu0 %503 }
  0xec   :  { %1140 = vrot.lane.b32.xlu0 %v558_v17, %s2842_s18  ;;  %v152_v17 = vld [vmem:[%s4892_s0 + $0x30] sm:$0xff] }
  0xed   :  { %v3849_v8 = vpop.xlane.xlu1 %461  ;;  %978 = vst.msk [vmem:[#allocation2 + $0x30] sm:$0xff] %vm345_vm0, %v152_v17 }
  0xee   :  { %1166 = vrot.lane.b32.xlu1 %v571_v3, %s2842_s18  ;;  %v589_v3 = vmul.f32 %v501_v0, %v3176_v25 }
  0xef   :  { %v3831_v50 = vpop.xlane.xlu0 %506 }
  0xf0   :  { %1363 = vrot.lane.b32.xlu0 %v2897_v6, %s2840_s15  ;;  %v572_v6 = vmul.f32 %v450_v42, %v3165_v12 }
  0xf1   :  { %v3860_v40 = vpop.xlane.xlu1 %464 }
  0xf2   :  { %1455 = vrot.lane.b32.xlu1 %v3144_v59, %s2840_s15  ;;  %v2777_v59 = vld [vmem:[%s4894_s2] sm:$0x1] }
  0xf3   :  { %v3847_v48 = vpop.xlane.xlu0 %509  ;;  %2274 = vmatmul.mubr.msk.f32.vlgmr.msra.gmra.mrb[0].mxu1 %vm345_vm0, %v2777_v59  ;;  %v590_v59 = vmul.f32 %v3814_v33, %v3192_v37 }
  0xf4   :  { %1108 = vrot.lane.b32.xlu0 %v542_v21, %s2842_s18  ;;  %v544_v21 = vmul.f32 %v2780_v43, %v3577_v44  ;;  %v592_v17 = vmul.f32 %v3847_v48, %v3224_v9 }
  0xf5   :  { %v3878_v31 = vpop.xlane.xlu1 %467 }
  0xf6   :  { %1200 = vrot.lane.b32.xlu1 %v588_v58, %s2842_s18  ;;  %v560_v58 = vmul.f32 %v3680_v5, %v3064_v15 }
  0xf7   :  { %v3858_v23 = vpop.xlane.xlu0 %512 }
  0xf8   :  { %1397 = vrot.lane.b32.xlu0 %v3048_v63, %s2840_s15 }
  0xf9   :  { %v3889_v42 = vpop.xlane.xlu1 %470 }
  0xfa   :  { %1423 = vrot.lane.b32.xlu1 %v3149_v60, %s2840_s15  ;;  %v181_v60 = vld [vmem:[%s4892_s0 + $0x118] sm:$0xff] }
  0xfb   :  { %v3876_v22 = vpop.xlane.xlu0 %515  ;;  %1007 = vst.msk [vmem:[#allocation2 + $0x118] sm:$0xff] %vm345_vm0, %v181_v60  ;;  %v574_v60 = vmul.f32 %v3816_v46, %v3197_v38 }
  0xfc   :  { %1142 = vrot.lane.b32.xlu0 %v559_v32, %s2842_s18 }
  0xfd   :  { %v3906_v61 = vpop.xlane.xlu1 %473 }
  0xfe   :  { %1168 = vrot.lane.b32.xlu1 %v572_v6, %s2842_s18 }
  0xff   :  { %v3887_v14 = vpop.xlane.xlu0 %518 }
 0x100   :  { %1365 = vrot.lane.b32.xlu0 %v2778_v24, %s2840_s15  ;;  %v591_v24 = vmul.f32 %v3831_v50, %v3208_v53  ;;  %v154_v50 = vld [vmem:[%s4892_s0 + $0x40] sm:$0xff] }
 0x101   :  { %v3929_v39 = vpop.xlane.xlu1 %476  ;;  %980 = vst.msk [vmem:[#allocation2 + $0x40] sm:$0xff] %vm345_vm0, %v154_v50 }
 0x102   :  { %1457 = vrot.lane.b32.xlu1 %v3160_v11, %s2840_s15  ;;  %v198_v11 = vld [vmem:[%s4892_s0 + $0x1a0] sm:$0xff] }
 0x103   :  { %v3901_v63 = vpop.xlane.xlu0 %521  ;;  %1024 = vst.msk [vmem:[#allocation2 + $0x1a0] sm:$0xff] %vm345_vm0, %v198_v11 }
 0x104   :  { %1110 = vrot.lane.b32.xlu0 %v543_v51, %s2842_s18 }
 0x105   :  { %v3947_v18 = vpop.xlane.xlu1 %479 }
 0x106   :  { %1202 = vrot.lane.b32.xlu1 %v589_v3, %s2842_s18  ;;  %v561_v3 = vmul.f32 %v3682_v62, %v3069_v16  ;;  %v200_v16 = vld [vmem:[%s4892_s0 + $0x1b0] sm:$0xff] }
 0x107   :  { %v3914_v0 = vpop.xlane.xlu0 %524  ;;  %1026 = vst.msk [vmem:[#allocation2 + $0x1b0] sm:$0xff] %vm345_vm0, %v200_v16  ;;  %v156_v16 = vld [vmem:[%s4892_s0 + $0x50] sm:$0xff] }
 0x108   :  { %1399 = vrot.lane.b32.xlu0 %v3053_v4, %s2840_s15  ;;  %982 = vst.msk [vmem:[#allocation2 + $0x50] sm:$0xff] %vm345_vm0, %v156_v16  ;;  %v2794_v16 = vld [vmem:[%s4893_s1 + $0x58] sm:$0xff] }
 0x109   :  { %v3963_v5 = vpop.xlane.xlu1 %482 }
 0x10a   :  { %1425 = vrot.lane.b32.xlu1 %v3165_v12, %s2840_s15  ;;  %v182_v12 = vld [vmem:[%s4892_s0 + $0x120] sm:$0xff] }
 0x10b   :  { %v3931_v57 = vpop.xlane.xlu0 %527  ;;  %1008 = vst.msk [vmem:[#allocation2 + $0x120] sm:$0xff] %vm345_vm0, %v182_v12 }
 0x10c   :  { %1144 = vrot.lane.b32.xlu0 %v560_v58, %s2842_s18 }
 0x10d   :  { %v3985_v32 = vpop.xlane.xlu1 %533 }
 0x10e   :  { %1170 = vrot.lane.b32.xlu1 %v573_v49, %s2842_s18  ;;  %v171_v49 = vld [vmem:[%s4892_s0 + $0xc8] sm:$0xff] }
 0x10f   :  { %v3940_v35 = vpop.xlane.xlu0 %530  ;;  %997 = vst.msk [vmem:[#allocation2 + $0xc8] sm:$0xff] %vm345_vm0, %v171_v49 }
 0x110   :  { %1367 = vrot.lane.b32.xlu0 %v2779_v52, %s2840_s15  ;;  %v575_v52 = vmul.f32 %v3833_v41, %v3213_v54  ;;  %v2783_v41 = vld [vmem:[%s4893_s1 + $0xc0] sm:$0xff] }
 0x111   :  { %v4000_v46 = vpop.xlane.xlu1 %440  ;;  %v562_v51 = vmul.f32 %v2783_v41, %v3700_v34  ;;  %v2784_v34 = vld [vmem:[%s4893_s1 + $0x40] sm:$0xff] }
 0x112   :  { %1459 = vrot.lane.b32.xlu1 %v3176_v25, %s2840_s15  ;;  %v199_v25 = vld [vmem:[%s4892_s0 + $0x1a8] sm:$0xff]  ;;  %v546_v48 = vmul.f32 %v2784_v34, %v3585_v1  ;;  %v185_v1 = vld [vmem:[%s4892_s0 + $0x138] sm:$0xff] }
 0x113   :  { %v3955_v4 = vpop.xlane.xlu0 %437  ;;  %1025 = vst.msk [vmem:[#allocation2 + $0x1a8] sm:$0xff] %vm345_vm0, %v199_v25  ;;  %v576_v25 = vmul.f32 %v3849_v8, %v3229_v10  ;;  %1011 = vst.msk [vmem:[#allocation2 + $0x138] sm:$0xff] %vm345_vm0, %v185_v1 }
 0x114   :  { %1112 = vrot.lane.b32.xlu0 %v544_v21, %s2842_s18 }
 0x115   :  { %v4018_v11 = vpop.xlane.xlu1 %488 }
 0x116   :  { %1204 = vrot.lane.b32.xlu1 %v590_v59, %s2842_s18 }
 0x117   :  { %v3965_v33 = vpop.xlane.xlu0 %485 }
 0x118   :  { %1401 = vrot.lane.b32.xlu0 %v3064_v15, %s2840_s15 }
 0x119   :  { %v4035_v55 = vpop.permute.xlu1 %1453 }
 0x11a   :  { %1427 = vrot.lane.b32.xlu1 %v3181_v26, %s2840_s15  ;;  %v183_v26 = vld [vmem:[%s4892_s0 + $0x128] sm:$0xff] }
 0x11b   :  { %v3978_v6 = vpop.xlane.xlu0 %536  ;;  %1009 = vst.msk [vmem:[#allocation2 + $0x128] sm:$0xff] %vm345_vm0, %v183_v26  ;;  %v2786_v26 = vld [vmem:[%s4893_s1 + $0x48] sm:$0xff] }
 0x11c   :  { %1146 = vrot.lane.b32.xlu0 %v561_v3, %s2842_s18 }
 0x11e   :  { %1172 = vrot.lane.b32.xlu1 %v574_v60, %s2842_s18  ;;  %v593_v60 = vmul.f32 %v3858_v23, %v3240_v29  ;;  %v4954_v23 = vld [vmem:[#allocation23_spill] sm:$0xff] }
 0x11f   :  { %v1390_v44 = vpop.permute.xlu0 %1389  ;;  %v547_v3 = vmul.f32 %v2786_v26, %v4954_v23 }
 0x120   :  { %1369 = vrot.lane.b32.xlu0 %v2780_v43, %s2840_s15 }
 0x122   :  { %1461 = vrot.lane.b32.xlu1 %v3192_v37, %s2840_s15  ;;  %v2781_v37 = vld [vmem:[%s4893_s1 + $0x38] sm:$0xff] }
 0x123   :  { %v1101_v15 = vpop.permute.xlu0 %1100  ;;  %v545_v62 = vmul.f32 %v2781_v37, %v3575_v36  ;;  %v2782_v36 = vld [vmem:[%s4893_s1 + $0xb8] sm:$0xff] }
 0x124   :  { %1293 = vst.msk [vmem:[#allocation2] sm:$0xff] %vm1292_vm3, %v1101_v15 }
 0x125   :  { %1114 = vrot.lane.b32.xlu0 %v545_v62, %s2842_s18 }
 0x126   :  { %1206 = vrot.lane.b32.xlu1 %v591_v24, %s2842_s18 }
 0x129   :  { %1403 = vrot.lane.b32.xlu0 %v2782_v36, %s2840_s15 }
 0x12a   :  { %1429 = vrot.lane.b32.xlu1 %v3197_v38, %s2840_s15  ;;  %v184_v38 = vld [vmem:[%s4892_s0 + $0x130] sm:$0xff] }
 0x12b   :  { %1010 = vst.msk [vmem:[#allocation2 + $0x130] sm:$0xff] %vm345_vm0, %v184_v38 }
 0x12d   :  { %1148 = vrot.lane.b32.xlu0 %v562_v51, %s2842_s18  ;;  %v594_v51 = vmul.f32 %v3876_v22, %v3256_v47  ;;  %v2788_v47 = vld [vmem:[%s4893_s1 + $0x50] sm:$0xff]  ;;  %v4955_v22 = vld [vmem:[#allocation25_spill] sm:$0xff] }
 0x12e   :  { %1174 = vrot.lane.b32.xlu1 %v575_v52, %s2842_s18  ;;  %v1135_v58 = vpop.permute.xlu0 %1134  ;;  %v2787_v52 = vld [vmem:[%s4893_s1 + $0xd0] sm:$0xff] }
 0x12f   :  { %1310 = vst.msk [vmem:[#allocation2 + $0x88] sm:$0xff] %vm1292_vm3, %v1135_v58 }
 0x131   :  { %1371 = vrot.lane.b32.xlu0 %v2781_v37, %s2840_s15  ;;  %v577_v37 = vmul.f32 %v3860_v40, %v3245_v30  ;;  %v564_v30 = vmul.f32 %v2787_v52, %v3716_v27  ;;  %v173_v27 = vld [vmem:[%s4892_s0 + $0xd8] sm:$0xff] }
 0x132   :  { %1463 = vrot.lane.b32.xlu1 %v3208_v53, %s2840_s15  ;;  %v201_v53 = vld [vmem:[%s4892_s0 + $0x1b8] sm:$0xff]  ;;  %v1358_v59 = vpop.permute.xlu0 %1357  ;;  %999 = vst.msk [vmem:[#allocation2 + $0xd8] sm:$0xff] %vm345_vm0, %v173_v27 }
 0x133   :  { %1027 = vst.msk [vmem:[#allocation2 + $0x1b8] sm:$0xff] %vm345_vm0, %v201_v53 }
 0x134   :  { %v1133_v12 = vpop.permute.xlu1 %1132  ;;  %1550 = vst.msk [vmem:[#allocation2] sm:$0xff] %vm1549_vm4, %v1358_v59  ;;  %v157_v59 = vld [vmem:[%s4892_s0 + $0x58] sm:$0xff] }
 0x135   :  { %1309 = vst.msk [vmem:[#allocation2 + $0x80] sm:$0xff] %vm1292_vm3, %v1133_v12  ;;  %1116 = vrot.lane.b32.xlu0 %v546_v48, %s2842_s18 }
 0x136   :  { %1566 = vst.msk [vmem:[#allocation2 + $0x80] sm:$0xff] %vm1549_vm4, %v1390_v44  ;;  %1208 = vrot.lane.b32.xlu1 %v592_v17, %s2842_s18  ;;  %v1103_v43 = vpop.permute.xlu0 %1102 }
 0x137   :  { %1294 = vst.msk [vmem:[#allocation2 + $0x8] sm:$0xff] %vm1292_vm3, %v1103_v43 }
 0x138   :  { %983 = vst.msk [vmem:[#allocation2 + $0x58] sm:$0xff] %vm345_vm0, %v157_v59 }
 0x139   :  { %1405 = vrot.lane.b32.xlu0 %v2783_v41, %s2840_s15 }
 0x13a   :  { %1431 = vrot.lane.b32.xlu1 %v3213_v54, %s2840_s15  ;;  %v2785_v54 = vld [vmem:[%s4893_s1 + $0xc8] sm:$0xff]  ;;  %v1392_v8 = vpop.permute.xlu0 %1391 }
 0x13b   :  { %v563_v21 = vmul.f32 %v2785_v54, %v3702_v19  ;;  %1567 = vst.msk [vmem:[#allocation2 + $0x88] sm:$0xff] %vm1549_vm4, %v1392_v8  ;;  %v4128_v50 = vld [vmem:[#allocation2] sm:$0xff] }
 0x13d   :  { %1150 = vrot.lane.b32.xlu0 %v563_v21, %s2842_s18  ;;  %v4101_v19 = vld [vmem:[#allocation2 + $0x80] sm:$0xff] }
 0x13e   :  { %1176 = vrot.lane.b32.xlu1 %v576_v25, %s2842_s18  ;;  %v1137_v44 = vpop.permute.xlu0 %1136  ;;  %v578_v25 = vmul.f32 %v2790_v7, %v3878_v31  ;;  %v2791_v31 = vld [vmem:[%s4893_s1 + $0xd8] sm:$0xff] }
 0x13f   :  { %1311 = vst.msk [vmem:[#allocation2 + $0x90] sm:$0xff] %vm1292_vm3, %v1137_v44  ;;  %v565_v21 = vmul.f32 %v2791_v31, %v3718_v28  ;;  %v174_v28 = vld [vmem:[%s4892_s0 + $0xe0] sm:$0xff]  ;;  %v2793_v44 = vld [vmem:[%s4893_s1 + $0x1c8] sm:$0xff] }
 0x140   :  { %1000 = vst.msk [vmem:[#allocation2 + $0xe0] sm:$0xff] %vm345_vm0, %v174_v28 }
 0x141   :  { %1373 = vrot.lane.b32.xlu0 %v2784_v34, %s2840_s15  ;;  %v2789_v34 = vld [vmem:[%s4893_s1 + $0x138] sm:$0xff] }
 0x142   :  { %1465 = vrot.lane.b32.xlu1 %v3224_v9, %s2840_s15  ;;  %v202_v9 = vld [vmem:[%s4892_s0 + $0x1c0] sm:$0xff]  ;;  %v1360_v15 = vpop.permute.xlu0 %1359  ;;  %v4110_v56 = vld [vmem:[#allocation2 + $0x88] sm:$0xff] }
 0x143   :  { %1028 = vst.msk [vmem:[#allocation2 + $0x1c0] sm:$0xff] %vm345_vm0, %v202_v9  ;;  %v2513_v24 = vpack.c.bf16 %v4110_v56, %v4101_v19  ;;  %v595_v9 = vmul.f32 %v2793_v44, %v3887_v14  ;;  %v204_v14 = vld [vmem:[%s4892_s0 + $0x1d0] sm:$0xff] }
 0x144   :  { %1551 = vst.msk [vmem:[#allocation2 + $0x8] sm:$0xff] %vm1549_vm4, %v1360_v15 }
 0x145   :  { %1118 = vrot.lane.b32.xlu0 %v547_v3, %s2842_s18  ;;  %2514 = vmatprep.subr.bf16.mxu0 %v2513_v24  ;;  %1030 = vst.msk [vmem:[#allocation2 + $0x1d0] sm:$0xff] %vm345_vm0, %v204_v14 }
 0x146   :  { %1210 = vrot.lane.b32.xlu1 %v593_v60, %s2842_s18  ;;  %v1105_v62 = vpop.permute.xlu0 %1104  ;;  %v2792_v60 = vld [vmem:[%s4893_s1 + $0x1c0] sm:$0xff] }
 0x147   :  { %1295 = vst.msk [vmem:[#allocation2 + $0x10] sm:$0xff] %vm1292_vm3, %v1105_v62 }
 0x149   :  { %1407 = vrot.lane.b32.xlu0 %v2785_v54, %s2840_s15  ;;  %v187_v54 = vld [vmem:[%s4892_s0 + $0x148] sm:$0xff] }
 0x14a   :  { %1433 = vrot.lane.b32.xlu1 %v3229_v10, %s2840_s15  ;;  %v186_v10 = vld [vmem:[%s4892_s0 + $0x140] sm:$0xff]  ;;  %v1394_v36 = vpop.permute.xlu0 %1393  ;;  %1013 = vst.msk [vmem:[#allocation2 + $0x148] sm:$0xff] %vm345_vm0, %v187_v54 }
 0x14b   :  { %v4137_v38 = vld [vmem:[#allocation2 + $0x8] sm:$0xff]  ;;  %1012 = vst.msk [vmem:[#allocation2 + $0x140] sm:$0xff] %vm345_vm0, %v186_v10 }
 0x14c   :  { %1568 = vst.msk [vmem:[#allocation2 + $0x90] sm:$0xff] %vm1549_vm4, %v1394_v36  ;;  %v2515_v41 = vpack.c.bf16 %v4137_v38, %v4128_v50  ;;  %v158_v36 = vld [vmem:[%s4892_s0 + $0x60] sm:$0xff] }
 0x14d   :  { %1152 = vrot.lane.b32.xlu0 %v564_v30, %s2842_s18  ;;  %984 = vst.msk [vmem:[#allocation2 + $0x60] sm:$0xff] %vm345_vm0, %v158_v36  ;;  %v176_v36 = vld [vmem:[%s4892_s0 + $0xf0] sm:$0xff] }
 0x14e   :  { %1178 = vrot.lane.b32.xlu1 %v577_v37, %s2842_s18  ;;  %2516 = vmatpush3.bf16.msra.mxu0 %v2515_v41  ;;  %v1139_v17 = vpop.permute.xlu0 %1138  ;;  %v4956_v37 = vld [vmem:[#allocation24_spill] sm:$0xff]  ;;  %v2795_v41 = vld [vmem:[%s4893_s1 + $0x148] sm:$0xff]  ;;  %1002 = vst.msk [vmem:[#allocation2 + $0xf0] sm:$0xff] %vm345_vm0, %v176_v36 }
 0x14f   :  { %1312 = vst.msk [vmem:[#allocation2 + $0x98] sm:$0xff] %vm1292_vm3, %v1139_v17  ;;  %v549_v62 = vmul.f32 %v2794_v16, %v4956_v37  ;;  %v579_v27 = vmul.f32 %v2795_v41, %v3889_v42  ;;  %v177_v36 = vld [vmem:[%s4892_s0 + $0xf8] sm:$0xff] }
 0x150   :  { %v1197_v40 = vpop.permute.xlu1 %1196  ;;  %1003 = vst.msk [vmem:[#allocation2 + $0xf8] sm:$0xff] %vm345_vm0, %v177_v36  ;;  %v208_v36 = vld [vmem:[%s4892_s0 + $0x1f0] sm:$0xff] }
 0x151   :  { %1341 = vst.msk [vmem:[#allocation2 + $0x180] sm:$0xff] %vm1292_vm3, %v1197_v40  ;;  %1375 = vrot.lane.b32.xlu0 %v2786_v26, %s2840_s15 }
 0x152   :  { %1598 = vst.msk [vmem:[#allocation2 + $0x180] sm:$0xff] %vm1549_vm4, %v4035_v55  ;;  %1467 = vrot.lane.b32.xlu1 %v3240_v29, %s2840_s15  ;;  %v203_v29 = vld [vmem:[%s4892_s0 + $0x1c8] sm:$0xff]  ;;  %v548_v55 = vmul.f32 %v2788_v47, %v4955_v22  ;;  %v1362_v58 = vpop.permute.xlu0 %1361  ;;  %v188_v22 = vld [vmem:[%s4892_s0 + $0x150] sm:$0xff] }
 0x153   :  { %1029 = vst.msk [vmem:[#allocation2 + $0x1c8] sm:$0xff] %vm345_vm0, %v203_v29  ;;  %v4221_v24 = vld [vmem:[#allocation2 + $0x90] sm:$0xff]  ;;  %1014 = vst.msk [vmem:[#allocation2 + $0x150] sm:$0xff] %vm345_vm0, %v188_v22 }
 0x154   :  { %v1165_v49 = vpop.permute.xlu1 %1164  ;;  %1552 = vst.msk [vmem:[#allocation2 + $0x10] sm:$0xff] %vm1549_vm4, %v1362_v58 }
 0x155   :  { %1325 = vst.msk [vmem:[#allocation2 + $0x100] sm:$0xff] %vm1292_vm3, %v1165_v49  ;;  %1120 = vrot.lane.b32.xlu0 %v548_v55, %s2842_s18  ;;  %v2796_v55 = vld [vmem:[%s4893_s1 + $0xe0] sm:$0xff] }
 0x156   :  { %1212 = vrot.lane.b32.xlu1 %v594_v51, %s2842_s18  ;;  %v1107_v1 = vpop.permute.xlu0 %1106  ;;  %1034 = vst.msk [vmem:[#allocation2 + $0x1f0] sm:$0xff] %vm345_vm0, %v208_v36 }
 0x157   :  { %1296 = vst.msk [vmem:[#allocation2 + $0x18] sm:$0xff] %vm1292_vm3, %v1107_v1 }
 0x158   :  { %v1199_v12 = vpop.permute.xlu1 %1198 }
 0x159   :  { %1342 = vst.msk [vmem:[#allocation2 + $0x188] sm:$0xff] %vm1292_vm3, %v1199_v12  ;;  %v4169_v53 = vld [vmem:[#allocation2 + $0x180] sm:$0xff]  ;;  %1409 = vrot.lane.b32.xlu0 %v2787_v52, %s2840_s15  ;;  %v566_v12 = vmul.f32 %v2796_v55, %v3740_v45  ;;  %v175_v45 = vld [vmem:[%s4892_s0 + $0xe8] sm:$0xff] }
 0x15a   :  { %1435 = vrot.lane.b32.xlu1 %v2789_v34, %s2840_s15  ;;  %v2583_v48 = vpack.i.bf16 %v4169_v53, %v4101_v19  ;;  %v1396_v2 = vpop.permute.xlu0 %1395  ;;  %1001 = vst.msk [vmem:[#allocation2 + $0xe8] sm:$0xff] %vm345_vm0, %v175_v45 }
 0x15b   :  { %1569 = vst.msk [vmem:[#allocation2 + $0x98] sm:$0xff] %vm1549_vm4, %v1396_v2  ;;  %v4257_v42 = vld [vmem:[#allocation2 + $0x10] sm:$0xff]  ;;  %v2798_v2 = vld [vmem:[%s4893_s1 + $0x60] sm:$0xff] }
 0x15c   :  { %v1422_v43 = vpop.permute.xlu1 %1421 }
 0x15d   :  { %1582 = vst.msk [vmem:[#allocation2 + $0x100] sm:$0xff] %vm1549_vm4, %v1422_v43  ;;  %1154 = vrot.lane.b32.xlu0 %v565_v21, %s2842_s18 }
 0x15e   :  { %1180 = vrot.lane.b32.xlu1 %v578_v25, %s2842_s18  ;;  %v1141_v23 = vpop.permute.xlu0 %1140  ;;  %v2797_v25 = vld [vmem:[%s4893_s1 + $0x1d0] sm:$0xff] }
 0x15f   :  { %1313 = vst.msk [vmem:[#allocation2 + $0xa0] sm:$0xff] %vm1292_vm3, %v1141_v23  ;;  %v596_v43 = vmul.f32 %v2797_v25, %v3901_v63  ;;  %v205_v63 = vld [vmem:[%s4892_s0 + $0x1d8] sm:$0xff] }
 0x160   :  { %v1167_v8 = vpop.permute.xlu1 %1166  ;;  %1031 = vst.msk [vmem:[#allocation2 + $0x1d8] sm:$0xff] %vm345_vm0, %v205_v63 }
 0x161   :  { %1326 = vst.msk [vmem:[#allocation2 + $0x108] sm:$0xff] %vm1292_vm3, %v1167_v8  ;;  %1377 = vrot.lane.b32.xlu0 %v2788_v47, %s2840_s15 }
 0x162   :  { %1469 = vrot.lane.b32.xlu1 %v2792_v60, %s2840_s15  ;;  %v1364_v52 = vpop.permute.xlu0 %1363  ;;  %v4230_v30 = vld [vmem:[#allocation2 + $0x98] sm:$0xff]  ;;  %v550_v60 = vmul.f32 %v2798_v2, %v3612_v20  ;;  %v2799_v20 = vld [vmem:[%s4893_s1 + $0x150] sm:$0xff] }
 0x163   :  { %1553 = vst.msk [vmem:[#allocation2 + $0x18] sm:$0xff] %vm1549_vm4, %v1364_v52  ;;  %v2517_v40 = vpack.c.bf16 %v4230_v30, %v4221_v24 }
 0x164   :  { %v1456_v26 = vpop.permute.xlu1 %1455  ;;  %v4212_v3 = vld [vmem:[#allocation2 + $0x100] sm:$0xff] }
 0x165   :  { %1599 = vst.msk [vmem:[#allocation2 + $0x188] sm:$0xff] %vm1549_vm4, %v1456_v26  ;;  %v2680_v15 = vpack.i.bf16 %v4212_v3, %v4128_v50  ;;  %1122 = vrot.lane.b32.xlu0 %v549_v62, %s2842_s18  ;;  %2518 = vmatprep.subr.bf16.mxu0 %v2517_v40  ;;  %v580_v26 = vmul.f32 %v2799_v20, %v3906_v61  ;;  %v189_v61 = vld [vmem:[%s4892_s0 + $0x158] sm:$0xff]  ;;  %v2800_v62 = vld [vmem:[%s4893_s1 + $0xe8] sm:$0xff] }
 0x166   :  { %1214 = vrot.lane.b32.xlu1 %v595_v9, %s2842_s18  ;;  %v1109_v49 = vpop.permute.xlu0 %1108  ;;  %v159_v9 = vld [vmem:[%s4892_s0 + $0x68] sm:$0xff]  ;;  %1015 = vst.msk [vmem:[#allocation2 + $0x158] sm:$0xff] %vm345_vm0, %v189_v61 }
 0x167   :  { %1297 = vst.msk [vmem:[#allocation2 + $0x20] sm:$0xff] %vm1292_vm3, %v1109_v49 }
 0x168   :  { %v1201_v10 = vpop.permute.xlu1 %1200  ;;  %985 = vst.msk [vmem:[#allocation2 + $0x68] sm:$0xff] %vm345_vm0, %v159_v9 }
 0x169   :  { %1343 = vst.msk [vmem:[#allocation2 + $0x190] sm:$0xff] %vm1292_vm3, %v1201_v10  ;;  %1411 = vrot.lane.b32.xlu0 %v2791_v31, %s2840_s15  ;;  %v567_v10 = vmul.f32 %v2800_v62, %v3742_v13  ;;  %v2801_v13 = vld [vmem:[%s4893_s1 + $0x1d8] sm:$0xff] }
 0x16a   :  { %1437 = vrot.lane.b32.xlu1 %v2790_v7, %s2840_s15  ;;  %v1398_v34 = vpop.permute.xlu0 %1397  ;;  %v4266_v59 = vld [vmem:[#allocation2 + $0x18] sm:$0xff] }
 0x16b   :  { %1570 = vst.msk [vmem:[#allocation2 + $0xa0] sm:$0xff] %vm1549_vm4, %v1398_v34  ;;  %v2519_v7 = vpack.c.bf16 %v4266_v59, %v4257_v42 }
 0x16c   :  { %v1424_v51 = vpop.permute.xlu1 %1423  ;;  %v4246_v17 = vld [vmem:[#allocation2 + $0x188] sm:$0xff] }
 0x16d   :  { %1583 = vst.msk [vmem:[#allocation2 + $0x108] sm:$0xff] %vm1549_vm4, %v1424_v51  ;;  %v2545_v29 = vpack.c.bf16 %v4246_v17, %v4169_v53  ;;  %v2585_v47 = vpack.i.bf16 %v4246_v17, %v4110_v56  ;;  %1156 = vrot.lane.b32.xlu0 %v566_v12, %s2842_s18  ;;  %2520 = vmatpush3.bf16.msra.mxu0 %v2519_v7  ;;  %v4957_v12 = vld [vmem:[#allocation26_spill] sm:$0xff] }
 0x16e   :  { %1182 = vrot.lane.b32.xlu1 %v579_v27, %s2842_s18  ;;  %v1143_v54 = vpop.permute.xlu0 %1142 }
 0x16f   :  { %2546 = vmatprep.subr.bf16.mxu1 %v2545_v29  ;;  %1314 = vst.msk [vmem:[#allocation2 + $0xa8] sm:$0xff] %vm1292_vm3, %v1143_v54 }
 0x170   :  { %v1169_v58 = vpop.permute.xlu1 %1168 }
 0x171   :  { %1327 = vst.msk [vmem:[#allocation2 + $0x110] sm:$0xff] %vm1292_vm3, %v1169_v58  ;;  %1379 = vrot.lane.b32.xlu0 %v2794_v16, %s2840_s15 }
 0x172   :  { %1471 = vrot.lane.b32.xlu1 %v2793_v44, %s2840_s15  ;;  %v1366_v44 = vpop.permute.xlu0 %1365  ;;  %v4349_v22 = vld [vmem:[#allocation2 + $0xa0] sm:$0xff] }
 0x173   :  { %1554 = vst.msk [vmem:[#allocation2 + $0x20] sm:$0xff] %vm1549_vm4, %v1366_v44  ;;  %v2804_v44 = vld [vmem:[%s4893_s1 + $0xf0] sm:$0xff] }
 0x174   :  { %v1458_v1 = vpop.permute.xlu1 %1457  ;;  %v4282_v31 = vld [vmem:[#allocation2 + $0x108] sm:$0xff]  ;;  %v568_v9 = vmul.f32 %v2804_v44, %v3955_v4  ;;  %v2805_v4 = vld [vmem:[%s4893_s1 + $0x1e0] sm:$0xff] }
 0x175   :  { %1600 = vst.msk [vmem:[#allocation2 + $0x190] sm:$0xff] %vm1549_vm4, %v1458_v1  ;;  %v2547_v21 = vpack.c.bf16 %v4282_v31, %v4212_v3  ;;  %v2682_v8 = vpack.i.bf16 %v4282_v31, %v4137_v38  ;;  %1124 = vrot.lane.b32.xlu0 %v550_v60, %s2842_s18  ;;  %v2803_v1 = vld [vmem:[%s4893_s1 + $0x158] sm:$0xff] }
 0x176   :  { %1216 = vrot.lane.b32.xlu1 %v596_v43, %s2842_s18  ;;  %v1111_v14 = vpop.permute.xlu0 %1110  ;;  %v160_v43 = vld [vmem:[%s4892_s0 + $0x70] sm:$0xff]  ;;  %v581_v54 = vmul.f32 %v2803_v1, %v3929_v39 }
 0x177   :  { %2548 = vmatpush3.bf16.msra.mxu1 %v2547_v21  ;;  %1298 = vst.msk [vmem:[#allocation2 + $0x28] sm:$0xff] %vm1292_vm3, %v1111_v14  ;;  %v190_v14 = vld [vmem:[%s4892_s0 + $0x160] sm:$0xff] }
 0x178   :  { %v1203_v28 = vpop.permute.xlu1 %1202  ;;  %986 = vst.msk [vmem:[#allocation2 + $0x70] sm:$0xff] %vm345_vm0, %v160_v43  ;;  %1016 = vst.msk [vmem:[#allocation2 + $0x160] sm:$0xff] %vm345_vm0, %v190_v14  ;;  %v161_v43 = vld [vmem:[%s4892_s0 + $0x78] sm:$0xff] }
 0x179   :  { %1344 = vst.msk [vmem:[#allocation2 + $0x198] sm:$0xff] %vm1292_vm3, %v1203_v28  ;;  %1413 = vrot.lane.b32.xlu0 %v2796_v55, %s2840_s15  ;;  %v2802_v55 = vld [vmem:[%s4893_s1 + $0x68] sm:$0xff] }
 0x17a   :  { %1439 = vrot.lane.b32.xlu1 %v2795_v41, %s2840_s15  ;;  %v1400_v40 = vpop.permute.xlu0 %1399  ;;  %v597_v41 = vmul.f32 %v2801_v13, %v3914_v0  ;;  %v206_v0 = vld [vmem:[%s4892_s0 + $0x1e0] sm:$0xff]  ;;  %v551_v58 = vmul.f32 %v2802_v55, %v4957_v12  ;;  %987 = vst.msk [vmem:[#allocation2 + $0x78] sm:$0xff] %vm345_vm0, %v161_v43  ;;  %v192_v43 = vld [vmem:[%s4892_s0 + $0x170] sm:$0xff] }
 0x17b   :  { %1571 = vst.msk [vmem:[#allocation2 + $0xa8] sm:$0xff] %vm1549_vm4, %v1400_v40  ;;  %v4385_v39 = vld [vmem:[#allocation2 + $0x20] sm:$0xff] }
 0x17c   :  { %v1426_v23 = vpop.permute.xlu1 %1425  ;;  %v4312_v16 = vld [vmem:[#allocation2 + $0x190] sm:$0xff]  ;;  %1032 = vst.msk [vmem:[#allocation2 + $0x1e0] sm:$0xff] %vm345_vm0, %v206_v0  ;;  %1018 = vst.msk [vmem:[#allocation2 + $0x170] sm:$0xff] %vm345_vm0, %v192_v43 }
 0x17d   :  { %1584 = vst.msk [vmem:[#allocation2 + $0x110] sm:$0xff] %vm1549_vm4, %v1426_v23  ;;  %v2587_v37 = vpack.i.bf16 %v4312_v16, %v4221_v24  ;;  %1158 = vrot.lane.b32.xlu0 %v567_v10, %s2842_s18 }
 0x17e   :  { %1184 = vrot.lane.b32.xlu1 %v580_v26, %s2842_s18  ;;  %v1145_v51 = vpop.permute.xlu0 %1144 }
 0x17f   :  { %1315 = vst.msk [vmem:[#allocation2 + $0xb0] sm:$0xff] %vm1292_vm3, %v1145_v51 }
 0x180   :  { %v1171_v52 = vpop.permute.xlu1 %1170 }
 0x181   :  { %1328 = vst.msk [vmem:[#allocation2 + $0x118] sm:$0xff] %vm1292_vm3, %v1171_v52  ;;  %1381 = vrot.lane.b32.xlu0 %v2798_v2, %s2840_s15 }
 0x182   :  { %1473 = vrot.lane.b32.xlu1 %v2797_v25, %s2840_s15  ;;  %v1368_v7 = vpop.permute.xlu0 %1367  ;;  %v4358_v45 = vld [vmem:[#allocation2 + $0xa8] sm:$0xff] }
 0x183   :  { %1555 = vst.msk [vmem:[#allocation2 + $0x28] sm:$0xff] %vm1549_vm4, %v1368_v7  ;;  %v2521_v25 = vpack.c.bf16 %v4358_v45, %v4349_v22 }
 0x184   :  { %v1460_v27 = vpop.permute.xlu1 %1459  ;;  %v4340_v49 = vld [vmem:[#allocation2 + $0x110] sm:$0xff] }
 0x185   :  { %1601 = vst.msk [vmem:[#allocation2 + $0x198] sm:$0xff] %vm1549_vm4, %v1460_v27  ;;  %v2684_v29 = vpack.i.bf16 %v4340_v49, %v4257_v42  ;;  %1126 = vrot.lane.b32.xlu0 %v551_v58, %s2842_s18  ;;  %2522 = vmatprep.subr.bf16.mxu0 %v2521_v25  ;;  %v4958_v27 = vld [vmem:[#allocation28_spill] sm:$0xff]  ;;  %v207_v58 = vld [vmem:[%s4892_s0 + $0x1e8] sm:$0xff] }
 0x186   :  { %1218 = vrot.lane.b32.xlu1 %v597_v41, %s2842_s18  ;;  %v1113_v63 = vpop.permute.xlu0 %1112  ;;  %1033 = vst.msk [vmem:[#allocation2 + $0x1e8] sm:$0xff] %vm345_vm0, %v207_v58 }
 0x187   :  { %1299 = vst.msk [vmem:[#allocation2 + $0x30] sm:$0xff] %vm1292_vm3, %v1113_v63  ;;  %v191_v63 = vld [vmem:[%s4892_s0 + $0x168] sm:$0xff] }
 0x188   :  { %v1205_v34 = vpop.permute.xlu1 %1204  ;;  %1017 = vst.msk [vmem:[#allocation2 + $0x168] sm:$0xff] %vm345_vm0, %v191_v63 }
 0x189   :  { %1345 = vst.msk [vmem:[#allocation2 + $0x1a0] sm:$0xff] %vm1292_vm3, %v1205_v34  ;;  %1415 = vrot.lane.b32.xlu0 %v2800_v62, %s2840_s15  ;;  %v598_v62 = vmul.f32 %v2805_v4, %v3931_v57  ;;  %v2806_v57 = vld [vmem:[%s4893_s1 + $0x70] sm:$0xff] }
 0x18a   :  { %1441 = vrot.lane.b32.xlu1 %v2799_v20, %s2840_s15  ;;  %v1402_v26 = vpop.permute.xlu0 %1401  ;;  %v4391_v23 = vld [vmem:[#allocation2 + $0x28] sm:$0xff]  ;;  %v552_v51 = vmul.f32 %v2806_v57, %v4958_v27 }
 0x18b   :  { %1572 = vst.msk [vmem:[#allocation2 + $0xb0] sm:$0xff] %vm1549_vm4, %v1402_v26  ;;  %v2523_v61 = vpack.c.bf16 %v4391_v23, %v4385_v39 }
 0x18c   :  { %v1428_v21 = vpop.permute.xlu1 %1427  ;;  %v4374_v2 = vld [vmem:[#allocation2 + $0x198] sm:$0xff] }
 0x18d   :  { %1585 = vst.msk [vmem:[#allocation2 + $0x118] sm:$0xff] %vm1549_vm4, %v1428_v21  ;;  %v2549_v60 = vpack.c.bf16 %v4374_v2, %v4312_v16  ;;  %v2589_v28 = vpack.i.bf16 %v4374_v2, %v4230_v30  ;;  %1160 = vrot.lane.b32.xlu0 %v568_v9, %s2842_s18  ;;  %2524 = vmatpush3.bf16.msra.mxu0 %v2523_v61  ;;  %v4959_v61 = vld [vmem:[#allocation27_spill] sm:$0xff] }
 0x18e   :  { %1186 = vrot.lane.b32.xlu1 %v581_v54, %s2842_s18  ;;  %v1147_v52 = vpop.permute.xlu0 %1146 }
 0x18f   :  { %2550 = vmatprep.subr.bf16.mxu1 %v2549_v60  ;;  %1316 = vst.msk [vmem:[#allocation2 + $0xb8] sm:$0xff] %vm1292_vm3, %v1147_v52 }
 0x190   :  { %v1173_v20 = vpop.permute.xlu1 %1172 }
 0x191   :  { %1329 = vst.msk [vmem:[#allocation2 + $0x120] sm:$0xff] %vm1292_vm3, %v1173_v20  ;;  %1383 = vrot.lane.b32.xlu0 %v2802_v55, %s2840_s15  ;;  %v2807_v55 = vld [vmem:[%s4893_s1 + $0x160] sm:$0xff] }
 0x192   :  { %1475 = vrot.lane.b32.xlu1 %v2801_v13, %s2840_s15  ;;  %v1370_v12 = vpop.permute.xlu0 %1369  ;;  %v582_v34 = vmul.f32 %v2807_v55, %v3947_v18  ;;  %v2808_v18 = vld [vmem:[%s4893_s1 + $0xf8] sm:$0xff]  ;;  %v4469_v14 = vld [vmem:[#allocation2 + $0xb0] sm:$0xff] }
 0x193   :  { %1556 = vst.msk [vmem:[#allocation2 + $0x30] sm:$0xff] %vm1549_vm4, %v1370_v12 }
 0x194   :  { %v1462_v10 = vpop.permute.xlu1 %1461  ;;  %v4407_v40 = vld [vmem:[#allocation2 + $0x118] sm:$0xff] }
 0x195   :  { %1602 = vst.msk [vmem:[#allocation2 + $0x1a0] sm:$0xff] %vm1549_vm4, %v1462_v10  ;;  %v2551_v13 = vpack.c.bf16 %v4407_v40, %v4340_v49  ;;  %v2686_v41 = vpack.i.bf16 %v4407_v40, %v4266_v59  ;;  %1128 = vrot.lane.b32.xlu0 %v552_v51, %s2842_s18 }
 0x196   :  { %1220 = vrot.lane.b32.xlu1 %v598_v62, %s2842_s18 }
 0x197   :  { %2552 = vmatpush3.bf16.msra.mxu1 %v2551_v13  ;;  %v1115_v25 = vpop.permute.xlu0 %1114 }
 0x198   :  { %v1207_v0 = vpop.permute.xlu1 %1206  ;;  %1300 = vst.msk [vmem:[#allocation2 + $0x38] sm:$0xff] %vm1292_vm3, %v1115_v25 }
 0x199   :  { %1346 = vst.msk [vmem:[#allocation2 + $0x1a8] sm:$0xff] %vm1292_vm3, %v1207_v0  ;;  %1417 = vrot.lane.b32.xlu0 %v2804_v44, %s2840_s15 }
 0x19a   :  { %1443 = vrot.lane.b32.xlu1 %v2803_v1, %s2840_s15  ;;  %v569_v1 = vmul.f32 %v2808_v18, %v4000_v46  ;;  %v2809_v46 = vld [vmem:[%s4893_s1 + $0x1e8] sm:$0xff] }
 0x19b   :  { %v1404_v21 = vpop.permute.xlu0 %1403  ;;  %v599_v60 = vmul.f32 %v2809_v46, %v3940_v35  ;;  %v2810_v35 = vld [vmem:[%s4893_s1 + $0x78] sm:$0xff] }
 0x19c   :  { %v1430_v7 = vpop.permute.xlu1 %1429  ;;  %1573 = vst.msk [vmem:[#allocation2 + $0xb8] sm:$0xff] %vm1549_vm4, %v1404_v21  ;;  %v4491_v12 = vld [vmem:[#allocation2 + $0x1a0] sm:$0xff] }
 0x19d   :  { %1586 = vst.msk [vmem:[#allocation2 + $0x120] sm:$0xff] %vm1549_vm4, %v1430_v7  ;;  %1162 = vrot.lane.b32.xlu0 %v569_v1, %s2842_s18 }
 0x19e   :  { %1188 = vrot.lane.b32.xlu1 %v582_v34, %s2842_s18  ;;  %v4501_v34 = vld [vmem:[#allocation2 + $0x30] sm:$0xff] }
 0x19f   :  { %v1149_v9 = vpop.permute.xlu0 %1148 }
 0x1a0   :  { %v1175_v54 = vpop.permute.xlu1 %1174  ;;  %1317 = vst.msk [vmem:[#allocation2 + $0xc0] sm:$0xff] %vm1292_vm3, %v1149_v9 }
 0x1a1   :  { %1330 = vst.msk [vmem:[#allocation2 + $0x128] sm:$0xff] %vm1292_vm3, %v1175_v54  ;;  %1385 = vrot.lane.b32.xlu0 %v2806_v57, %s2840_s15  ;;  %v2811_v57 = vld [vmem:[%s4893_s1 + $0x168] sm:$0xff] }
 0x1a2   :  { %1477 = vrot.lane.b32.xlu1 %v2805_v4, %s2840_s15  ;;  %v553_v4 = vmul.f32 %v2810_v35, %v4959_v61  ;;  %v583_v27 = vmul.f32 %v2811_v57, %v3963_v5  ;;  %v2813_v61 = vld [vmem:[%s4893_s1 + $0x170] sm:$0xff] }
 0x1a3   :  { %v1372_v10 = vpop.permute.xlu0 %1371  ;;  %v4475_v52 = vld [vmem:[#allocation2 + $0xb8] sm:$0xff] }
 0x1a4   :  { %v1464_v44 = vpop.permute.xlu1 %1463  ;;  %v4461_v20 = vld [vmem:[#allocation2 + $0x120] sm:$0xff]  ;;  %1557 = vst.msk [vmem:[#allocation2 + $0x38] sm:$0xff] %vm1549_vm4, %v1372_v10  ;;  %v2525_v13 = vpack.c.bf16 %v4475_v52, %v4469_v14 }
 0x1a5   :  { %1603 = vst.msk [vmem:[#allocation2 + $0x1a8] sm:$0xff] %vm1549_vm4, %v1464_v44  ;;  %v2688_v26 = vpack.i.bf16 %v4461_v20, %v4385_v39  ;;  %1130 = vrot.lane.b32.xlu0 %v553_v4, %s2842_s18  ;;  %v584_v4 = vmul.f32 %v2813_v61, %v3965_v33  ;;  %v2814_v33 = vld [vmem:[%s4893_s1 + $0x1f8] sm:$0xff] }
 0x1a6   :  { %1222 = vrot.lane.b32.xlu1 %v599_v60, %s2842_s18  ;;  %2526 = vmatprep.subr.bf16.mxu0 %v2525_v13 }
 0x1a7   :  { %v1117_v0 = vpop.permute.xlu0 %1116 }
 0x1a8   :  { %v1209_v62 = vpop.permute.xlu1 %1208  ;;  %1301 = vst.msk [vmem:[#allocation2 + $0x40] sm:$0xff] %vm1292_vm3, %v1117_v0 }
 0x1a9   :  { %1347 = vst.msk [vmem:[#allocation2 + $0x1b0] sm:$0xff] %vm1292_vm3, %v1209_v62  ;;  %1419 = vrot.lane.b32.xlu0 %v2808_v18, %s2840_s15  ;;  %v2812_v18 = vld [vmem:[%s4893_s1 + $0x1f0] sm:$0xff] }
 0x1aa   :  { %1445 = vrot.lane.b32.xlu1 %v2807_v55, %s2840_s15  ;;  %v600_v54 = vmul.f32 %v2812_v18, %v3985_v32  ;;  %v209_v32 = vld [vmem:[%s4892_s0 + $0x1f8] sm:$0xff] }
 0x1ab   :  { %v1406_v7 = vpop.permute.xlu0 %1405  ;;  %v4503_v25 = vld [vmem:[#allocation2 + $0x38] sm:$0xff]  ;;  %1035 = vst.msk [vmem:[#allocation2 + $0x1f8] sm:$0xff] %vm345_vm0, %v209_v32 }
 0x1ac   :  { %v1432_v51 = vpop.permute.xlu1 %1431  ;;  %v4493_v58 = vld [vmem:[#allocation2 + $0x1a8] sm:$0xff]  ;;  %1574 = vst.msk [vmem:[#allocation2 + $0xc0] sm:$0xff] %vm1549_vm4, %v1406_v7  ;;  %v2527_v1 = vpack.c.bf16 %v4503_v25, %v4501_v34 }
 0x1ad   :  { %1587 = vst.msk [vmem:[#allocation2 + $0x128] sm:$0xff] %vm1549_vm4, %v1432_v51  ;;  %v2553_v55 = vpack.c.bf16 %v4493_v58, %v4491_v12  ;;  %1387 = vrot.lane.b32.xlu0 %v2810_v35, %s2840_s15  ;;  %v2593_v16 = vpack.i.bf16 %v4493_v58, %v4358_v45 }
 0x1ae   :  { %1190 = vrot.lane.b32.xlu1 %v583_v27, %s2842_s18  ;;  %2528 = vmatpush3.bf16.msra.mxu0 %v2527_v1  ;;  %v601_v27 = vmul.f32 %v2814_v33, %v3978_v6 }
 0x1af   :  { %2554 = vmatprep.subr.bf16.mxu1 %v2553_v55  ;;  %v1151_v63 = vpop.permute.xlu0 %1150 }
 0x1b0   :  { %v1177_v5 = vpop.permute.xlu1 %1176  ;;  %1318 = vst.msk [vmem:[#allocation2 + $0xc8] sm:$0xff] %vm1292_vm3, %v1151_v63 }
 0x1b1   :  { %1331 = vst.msk [vmem:[#allocation2 + $0x130] sm:$0xff] %vm1292_vm3, %v1177_v5 }
 0x1b2   :  { %1479 = vrot.lane.b32.xlu1 %v2809_v46, %s2840_s15 }
 0x1b3   :  { %v1374_v35 = vpop.permute.xlu0 %1373  ;;  %v4560_v7 = vld [vmem:[#allocation2 + $0xc0] sm:$0xff] }
 0x1b4   :  { %v1466_v21 = vpop.permute.xlu1 %1465  ;;  %v4519_v60 = vld [vmem:[#allocation2 + $0x128] sm:$0xff]  ;;  %1558 = vst.msk [vmem:[#allocation2 + $0x40] sm:$0xff] %vm1549_vm4, %v1374_v35 }
 0x1b5   :  { %1604 = vst.msk [vmem:[#allocation2 + $0x1b0] sm:$0xff] %vm1549_vm4, %v1466_v21  ;;  %v2555_v46 = vpack.c.bf16 %v4519_v60, %v4461_v20  ;;  %v2690_v44 = vpack.i.bf16 %v4519_v60, %v4391_v23 }
 0x1b6   :  { %1224 = vrot.lane.b32.xlu1 %v600_v54, %s2842_s18  ;;  %v2815_v54 = vld [vmem:[%s4893_s1 + $0x178] sm:$0xff] }
 0x1b7   :  { %2556 = vmatpush3.bf16.msra.mxu1 %v2555_v46  ;;  %v1119_v10 = vpop.permute.xlu0 %1118  ;;  %v585_v21 = vmul.f32 %v2815_v54, %v4018_v11 }
 0x1b8   :  { %v1211_v9 = vpop.permute.xlu1 %1210  ;;  %1302 = vst.msk [vmem:[#allocation2 + $0x48] sm:$0xff] %vm1292_vm3, %v1119_v10 }
 0x1b9   :  { %1348 = vst.msk [vmem:[#allocation2 + $0x1b8] sm:$0xff] %vm1292_vm3, %v1211_v9 }
 0x1ba   :  { %1447 = vrot.lane.b32.xlu1 %v2811_v57, %s2840_s15  ;;  %v193_v57 = vld [vmem:[%s4892_s0 + $0x178] sm:$0xff]  ;;  %s2119_s0 = sshll.u32 %s2845_s21, 4  ;;  %s2120_s0 = int_to_ptr.vmem [resolvable:$true] %s2119_s0 }
 0x1bb   :  { %v1408_v13 = vpop.permute.xlu0 %1407  ;;  %1019 = vst.msk [vmem:[#allocation2 + $0x178] sm:$0xff] %vm345_vm0, %v193_v57  ;;  %s2816_s22 = scalar_lea.vmem %s2120_s0, 64  ;;  %p2821_p1 = scmp.lt.s32.totalorder %s2120_s0, %s2120_s0 }
 0x1bc   :  { %v1434_v62 = vpop.permute.xlu1 %1433  ;;  %1575 = vst.msk [vmem:[#allocation2 + $0xc8] sm:$0xff] %vm1549_vm4, %v1408_v13  ;;  %v1668_v9 = vld [vmem:[#allocation2 + $0x1b0] sm:$0xff]  ;;  %p2817_p0 = scmp.ne.s32.totalorder %s2120_s0, %s2816_s22  ;;  %p2822_p2 = scmp.lt.s32.totalorder %s2816_s22, %s2816_s22 }
 0x1bd   :  { %1588 = vst.msk [vmem:[#allocation2 + $0x130] sm:$0xff] %vm1549_vm4, %v1434_v62  ;;  %v2595_v2 = vpack.i.bf16 %v1668_v9, %v4469_v14 }
 0x1be   :  { %1192 = vrot.lane.b32.xlu1 %v584_v4, %s2842_s18  ;;  %v4576_v4 = vld [vmem:[#allocation2 + $0x40] sm:$0xff]  ;;  %p2823_p3 = por %p2822_p2, %p2821_p1 }
 0x1bf   :  { %v1153_v0 = vpop.permute.xlu0 %1152 }
 0x1c0   :  { %v1179_v36 = vpop.permute.xlu1 %1178  ;;  %1319 = vst.msk [vmem:[#allocation2 + $0xd0] sm:$0xff] %vm1292_vm3, %v1153_v0  ;;  %p2824_p4 = pnand %p2823_p3, %p2817_p0 }
 0x1c1   :  { %1332 = vst.msk [vmem:[#allocation2 + $0x138] sm:$0xff] %vm1292_vm3, %v1179_v36 }
 0x1c2   :  { %1481 = vrot.lane.b32.xlu1 %v2812_v18, %s2840_s15 }
 0x1c3   :  { %v1376_v1 = vpop.permute.xlu0 %1375  ;;  %v4562_v18 = vld [vmem:[#allocation2 + $0xc8] sm:$0xff] }
 0x1c4   :  { %v1468_v51 = vpop.permute.xlu1 %1467  ;;  %v4553_v55 = vld [vmem:[#allocation2 + $0x130] sm:$0xff]  ;;  %1559 = vst.msk [vmem:[#allocation2 + $0x48] sm:$0xff] %vm1549_vm4, %v1376_v1  ;;  %v2529_v6 = vpack.c.bf16 %v4562_v18, %v4560_v7 }
 0x1c5   :  { %1605 = vst.msk [vmem:[#allocation2 + $0x1b8] sm:$0xff] %vm1549_vm4, %v1468_v51  ;;  %v2692_v5 = vpack.i.bf16 %v4553_v55, %v4501_v34 }
 0x1c6   :  { %1226 = vrot.lane.b32.xlu1 %v601_v27, %s2842_s18  ;;  %2530 = vmatprep.subr.bf16.mxu0 %v2529_v6 }
 0x1c7   :  { %v1121_v46 = vpop.permute.xlu0 %1120 }
 0x1c8   :  { %v1213_v43 = vpop.permute.xlu1 %1212  ;;  %1303 = vst.msk [vmem:[#allocation2 + $0x50] sm:$0xff] %vm1292_vm3, %v1121_v46 }
 0x1c9   :  { %1349 = vst.msk [vmem:[#allocation2 + $0x1c0] sm:$0xff] %vm1292_vm3, %v1213_v43 }
 0x1ca   :  { %1449 = vrot.lane.b32.xlu1 %v2813_v61, %s2840_s15 }
 0x1cb   :  { %v1410_v62 = vpop.permute.xlu0 %1409  ;;  %2584 = vxpose.xlu0.b32.start [1/16] (narrow) %v2583_v48, 104  ;;  %v4581_v11 = vld [vmem:[#allocation2 + $0x48] sm:$0xff] }
 0x1cc   :  { %v1436_v63 = vpop.permute.xlu1 %1435  ;;  %v1669_v35 = vld [vmem:[#allocation2 + $0x1b8] sm:$0xff]  ;;  %1576 = vst.msk [vmem:[#allocation2 + $0xd0] sm:$0xff] %vm1549_vm4, %v1410_v62  ;;  %v2531_v10 = vpack.c.bf16 %v4581_v11, %v4576_v4 }
 0x1cd   :  { %1589 = vst.msk [vmem:[#allocation2 + $0x138] sm:$0xff] %vm1549_vm4, %v1436_v63  ;;  %v2557_v32 = vpack.c.bf16 %v1669_v35, %v1668_v9  ;;  %v2597_v58 = vpack.i.bf16 %v1669_v35, %v4475_v52 }
 0x1ce   :  { %1194 = vrot.lane.b32.xlu1 %v585_v21, %s2842_s18  ;;  %2532 = vmatpush3.bf16.msra.mxu0 %v2531_v10 }
 0x1cf   :  { %2558 = vmatprep.subr.bf16.mxu1 %v2557_v32  ;;  %v1155_v13 = vpop.permute.xlu0 %1154  ;;  %2586 = vxpose.xlu0.b32.cont [2/16] (narrow) %v2585_v47, 104  ;;  %v2591_v47 = vpack.i.bf16 %v4491_v12, %v4349_v22 }
 0x1d0   :  { %v1181_v61 = vpop.permute.xlu1 %1180  ;;  %1320 = vst.msk [vmem:[#allocation2 + $0xd8] sm:$0xff] %vm1292_vm3, %v1155_v13 }
 0x1d1   :  { %1333 = vst.msk [vmem:[#allocation2 + $0x140] sm:$0xff] %vm1292_vm3, %v1181_v61 }
 0x1d2   :  { %1483 = vrot.lane.b32.xlu1 %v2814_v33, %s2840_s15 }
 0x1d3   :  { %v1378_v33 = vpop.permute.xlu0 %1377  ;;  %2588 = vxpose.xlu0.b32.cont [3/16] (narrow) %v2587_v37, 104  ;;  %v1640_v22 = vld [vmem:[#allocation2 + $0xd0] sm:$0xff] }
 0x1d4   :  { %v1470_v36 = vpop.permute.xlu1 %1469  ;;  %v4591_v19 = vld [vmem:[#allocation2 + $0x138] sm:$0xff]  ;;  %1560 = vst.msk [vmem:[#allocation2 + $0x50] sm:$0xff] %vm1549_vm4, %v1378_v33 }
 0x1d5   :  { %1606 = vst.msk [vmem:[#allocation2 + $0x1c0] sm:$0xff] %vm1549_vm4, %v1470_v36  ;;  %v2559_v53 = vpack.c.bf16 %v4591_v19, %v4553_v55  ;;  %v2694_v48 = vpack.i.bf16 %v4591_v19, %v4503_v25 }
 0x1d6   :  { %1451 = vrot.lane.b32.xlu1 %v2815_v54, %s2840_s15 }
 0x1d7   :  { %2560 = vmatpush3.bf16.msra.mxu1 %v2559_v53  ;;  %v1123_v17 = vpop.permute.xlu0 %1122  ;;  %2590 = vxpose.xlu0.b32.cont [4/16] (narrow) %v2589_v28, 104 }
 0x1d8   :  { %v1215_v57 = vpop.permute.xlu1 %1214  ;;  %1304 = vst.msk [vmem:[#allocation2 + $0x58] sm:$0xff] %vm1292_vm3, %v1123_v17 }
 0x1d9   :  { %1350 = vst.msk [vmem:[#allocation2 + $0x1c8] sm:$0xff] %vm1292_vm3, %v1215_v57 }
 0x1db   :  { %v1412_v24 = vpop.permute.xlu0 %1411  ;;  %2592 = vxpose.xlu0.b32.cont [5/16] (narrow) %v2591_v47, 104  ;;  %v4628_v21 = vld [vmem:[#allocation2 + $0x50] sm:$0xff] }
 0x1dc   :  { %v1438_v56 = vpop.permute.xlu1 %1437  ;;  %1577 = vst.msk [vmem:[#allocation2 + $0xd8] sm:$0xff] %vm1549_vm4, %v1412_v24  ;;  %v1670_v0 = vld [vmem:[#allocation2 + $0x1c0] sm:$0xff] }
 0x1dd   :  { %1590 = vst.msk [vmem:[#allocation2 + $0x140] sm:$0xff] %vm1549_vm4, %v1438_v56  ;;  %v2599_v54 = vpack.i.bf16 %v1670_v0, %v4560_v7 }
 0x1df   :  { %v1157_v30 = vpop.permute.xlu0 %1156  ;;  %2594 = vxpose.xlu0.b32.cont [6/16] (narrow) %v2593_v16, 104 }
 0x1e0   :  { %v1183_v27 = vpop.permute.xlu1 %1182  ;;  %1321 = vst.msk [vmem:[#allocation2 + $0xe0] sm:$0xff] %vm1292_vm3, %v1157_v30 }
 0x1e1   :  { %1334 = vst.msk [vmem:[#allocation2 + $0x148] sm:$0xff] %vm1292_vm3, %v1183_v27 }
 0x1e3   :  { %v1380_v12 = vpop.permute.xlu0 %1379  ;;  %2596 = vxpose.xlu0.b32.cont [7/16] (narrow) %v2595_v2, 104  ;;  %v4619_v51 = vld [vmem:[#allocation2 + $0xd8] sm:$0xff] }
 0x1e4   :  { %v1472_v37 = vpop.permute.xlu1 %1471  ;;  %1561 = vst.msk [vmem:[#allocation2 + $0x58] sm:$0xff] %vm1549_vm4, %v1380_v12  ;;  %v2533_v45 = vpack.c.bf16 %v4619_v51, %v1640_v22  ;;  %v4637_v61 = vld [vmem:[#allocation2 + $0x140] sm:$0xff] }
 0x1e5   :  { %1607 = vst.msk [vmem:[#allocation2 + $0x1c8] sm:$0xff] %vm1549_vm4, %v1472_v37  ;;  %v2696_v34 = vpack.i.bf16 %v4637_v61, %v4576_v4 }
 0x1e6   :  { %2534 = vmatprep.subr.bf16.mxu0 %v2533_v45 }
 0x1e7   :  { %v1125_v1 = vpop.permute.xlu0 %1124  ;;  %2598 = vxpose.xlu0.b32.cont [8/16] (narrow) %v2597_v58, 104 }
 0x1e8   :  { %v1217_v28 = vpop.permute.xlu1 %1216  ;;  %1305 = vst.msk [vmem:[#allocation2 + $0x60] sm:$0xff] %vm1292_vm3, %v1125_v1 }
 0x1e9   :  { %1351 = vst.msk [vmem:[#allocation2 + $0x1d0] sm:$0xff] %vm1292_vm3, %v1217_v28 }
 0x1eb   :  { %v1414_v46 = vpop.permute.xlu0 %1413  ;;  %2600 = vxpose.xlu0.b32.cont [9/16] (narrow) %v2599_v54, 104  ;;  %v4630_v52 = vld [vmem:[#allocation2 + $0x58] sm:$0xff] }
 0x1ec   :  { %v1440_v43 = vpop.permute.xlu1 %1439  ;;  %v1671_v14 = vld [vmem:[#allocation2 + $0x1c8] sm:$0xff]  ;;  %1578 = vst.msk [vmem:[#allocation2 + $0xe0] sm:$0xff] %vm1549_vm4, %v1414_v46  ;;  %v2535_v9 = vpack.c.bf16 %v4630_v52, %v4628_v21 }
 0x1ed   :  { %1591 = vst.msk [vmem:[#allocation2 + $0x148] sm:$0xff] %vm1549_vm4, %v1440_v43  ;;  %v2561_v6 = vpack.c.bf16 %v1671_v14, %v1670_v0  ;;  %v2601_v35 = vpack.i.bf16 %v1671_v14, %v4562_v18 }
 0x1ee   :  { %2536 = vmatpush3.bf16.msra.mxu0 %v2535_v9 }
 0x1ef   :  { %2562 = vmatprep.subr.bf16.mxu1 %v2561_v6  ;;  %v1159_v7 = vpop.permute.xlu0 %1158  ;;  %2602 = vxpose.xlu0.b32.cont [10/16] (narrow) %v2601_v35, 104 }
 0x1f0   :  { %v1185_v63 = vpop.permute.xlu1 %1184  ;;  %1322 = vst.msk [vmem:[#allocation2 + $0xe8] sm:$0xff] %vm1292_vm3, %v1159_v7 }
 0x1f1   :  { %1335 = vst.msk [vmem:[#allocation2 + $0x150] sm:$0xff] %vm1292_vm3, %v1185_v63 }
 0x1f3   :  { %v1382_v13 = vpop.permute.xlu0 %1381  ;;  %v1642_v24 = vld [vmem:[#allocation2 + $0xe0] sm:$0xff] }
 0x1f4   :  { %v1474_v32 = vpop.permute.xlu1 %1473  ;;  %v4639_v62 = vld [vmem:[#allocation2 + $0x148] sm:$0xff]  ;;  %1562 = vst.msk [vmem:[#allocation2 + $0x60] sm:$0xff] %vm1549_vm4, %v1382_v13 }
 0x1f5   :  { %1608 = vst.msk [vmem:[#allocation2 + $0x1d0] sm:$0xff] %vm1549_vm4, %v1474_v32  ;;  %v2563_v10 = vpack.c.bf16 %v4639_v62, %v4637_v61  ;;  %v2698_v25 = vpack.i.bf16 %v4639_v62, %v4581_v11 }
 0x1f7   :  { %2564 = vmatpush3.bf16.msra.mxu1 %v2563_v10  ;;  %v1127_v53 = vpop.permute.xlu0 %1126 }
 0x1f8   :  { %v1219_v36 = vpop.permute.xlu1 %1218  ;;  %1306 = vst.msk [vmem:[#allocation2 + $0x68] sm:$0xff] %vm1292_vm3, %v1127_v53 }
 0x1f9   :  { %1352 = vst.msk [vmem:[#allocation2 + $0x1d8] sm:$0xff] %vm1292_vm3, %v1219_v36 }
 0x1fb   :  { %v1416_v17 = vpop.permute.xlu0 %1415 }
 0x1fc   :  { %v1442_v18 = vpop.permute.xlu1 %1441  ;;  %v1672_v57 = vld [vmem:[#allocation2 + $0x1d0] sm:$0xff]  ;;  %1579 = vst.msk [vmem:[#allocation2 + $0xe8] sm:$0xff] %vm1549_vm4, %v1416_v17  ;;  %v862_v17 = vpop.f32.mrb[0].mxu0 }
 0x1fd   :  { %1592 = vst.msk [vmem:[#allocation2 + $0x150] sm:$0xff] %vm1549_vm4, %v1442_v18  ;;  %v2603_v33 = vpack.i.bf16 %v1672_v57, %v1640_v22 }
 0x1ff   :  { %2604 = vxpose.xlu0.b32.cont [11/16] (narrow) %v2603_v33, 104  ;;  %2681 = vxpose.xlu1.b32.start [1/16] (narrow) %v2680_v15, 104  ;;  %v1161_v27 = vpop.permute.xlu0 %1160 }
 0x200   :  { %v1187_v56 = vpop.permute.xlu1 %1186  ;;  %1323 = vst.msk [vmem:[#allocation2 + $0xf0] sm:$0xff] %vm1292_vm3, %v1161_v27 }
 0x201   :  { %1336 = vst.msk [vmem:[#allocation2 + $0x158] sm:$0xff] %vm1292_vm3, %v1187_v56 }
 0x203   :  { %2683 = vxpose.xlu1.b32.cont [2/16] (narrow) %v2682_v8, 104  ;;  %v1384_v3 = vpop.permute.xlu0 %1383  ;;  %v4662_v15 = vld [vmem:[#allocation2 + $0xe8] sm:$0xff] }
 0x204   :  { %v1476_v47 = vpop.permute.xlu1 %1475  ;;  %1563 = vst.msk [vmem:[#allocation2 + $0x68] sm:$0xff] %vm1549_vm4, %v1384_v3  ;;  %v2537_v38 = vpack.c.bf16 %v4662_v15, %v1642_v24  ;;  %v1656_v39 = vld [vmem:[#allocation2 + $0x150] sm:$0xff] }
 0x205   :  { %1609 = vst.msk [vmem:[#allocation2 + $0x1d8] sm:$0xff] %vm1549_vm4, %v1476_v47  ;;  %v2700_v4 = vpack.i.bf16 %v1656_v39, %v4628_v21  ;;  %v933_v47 = vpop.f32.mrb[0].mxu1 }
 0x206   :  { %2538 = vmatprep.subr.bf16.mxu0 %v2537_v38 }
 0x207   :  { %2685 = vxpose.xlu1.b32.cont [3/16] (narrow) %v2684_v29, 104  ;;  %v1129_v8 = vpop.permute.xlu0 %1128  ;;  %v4673_v29 = vld [vmem:[#allocation2 + $0x60] sm:$0xff] }
 0x208   :  { %v1221_v50 = vpop.permute.xlu1 %1220  ;;  %1307 = vst.msk [vmem:[#allocation2 + $0x70] sm:$0xff] %vm1292_vm3, %v1129_v8 }
 0x209   :  { %1353 = vst.msk [vmem:[#allocation2 + $0x1e0] sm:$0xff] %vm1292_vm3, %v1221_v50  ;;  %v2843_v50 = vmov 1966171168  }
 0x20a   :  { %v945_v3 = vunpack.c.l.s4 %v2843_v50 }
 0x20b   :  { %2687 = vxpose.xlu1.b32.cont [4/16] (narrow) %v2686_v41, 104  ;;  %v1418_v40 = vpop.permute.xlu0 %1417  ;;  %v4678_v41 = vld [vmem:[#allocation2 + $0x68] sm:$0xff] }
 0x20c   :  { %v1444_v31 = vpop.permute.xlu1 %1443  ;;  %v1673_v16 = vld [vmem:[#allocation2 + $0x1d8] sm:$0xff]  ;;  %1580 = vst.msk [vmem:[#allocation2 + $0xf0] sm:$0xff] %vm1549_vm4, %v1418_v40  ;;  %v2539_v37 = vpack.c.bf16 %v4678_v41, %v4673_v29 }
 0x20d   :  { %1593 = vst.msk [vmem:[#allocation2 + $0x158] sm:$0xff] %vm1549_vm4, %v1444_v31  ;;  %v2565_v42 = vpack.c.bf16 %v1673_v16, %v1672_v57  ;;  %v2605_v49 = vpack.i.bf16 %v1673_v16, %v4619_v51 }
 0x20e   :  { %2540 = vmatpush3.bf16.msra.mxu0 %v2539_v37 }
 0x20f   :  { %2566 = vmatprep.subr.bf16.mxu1 %v2565_v42  ;;  %2606 = vxpose.xlu0.b32.cont [12/16] (narrow) %v2605_v49, 104  ;;  %v1163_v2 = vpop.permute.xlu0 %1162  ;;  %v946_v42 = vunpack.c.0.s8 %v945_v3 }
 0x210   :  { %2689 = vxpose.xlu1.b32.cont [5/16] (narrow) %v2688_v26, 104  ;;  %v1189_v59 = vpop.permute.xlu1 %1188  ;;  %1324 = vst.msk [vmem:[#allocation2 + $0xf8] sm:$0xff] %vm1292_vm3, %v1163_v2 }
 0x211   :  { %1337 = vst.msk [vmem:[#allocation2 + $0x160] sm:$0xff] %vm1292_vm3, %v1189_v59 }
 0x213   :  { %v1386_v28 = vpop.permute.xlu0 %1385  ;;  %v1644_v51 = vld [vmem:[#allocation2 + $0xf0] sm:$0xff] }
 0x214   :  { %2691 = vxpose.xlu1.b32.cont [6/16] (narrow) %v2690_v44, 104  ;;  %v1478_v30 = vpop.permute.xlu1 %1477  ;;  %v1657_v20 = vld [vmem:[#allocation2 + $0x158] sm:$0xff]  ;;  %1564 = vst.msk [vmem:[#allocation2 + $0x70] sm:$0xff] %vm1549_vm4, %v1386_v28 }
 0x215   :  { %1610 = vst.msk [vmem:[#allocation2 + $0x1e0] sm:$0xff] %vm1549_vm4, %v1478_v30  ;;  %v2567_v26 = vpack.c.bf16 %v1657_v20, %v1656_v39  ;;  %v2702_v43 = vpack.i.bf16 %v1657_v20, %v4630_v52 }
 0x217   :  { %2568 = vmatpush3.bf16.msra.mxu1 %v2567_v26  ;;  %v1131_v60 = vpop.permute.xlu0 %1130 }
 0x218   :  { %2693 = vxpose.xlu1.b32.cont [7/16] (narrow) %v2692_v5, 104  ;;  %v1223_v22 = vpop.permute.xlu1 %1222  ;;  %1308 = vst.msk [vmem:[#allocation2 + $0x78] sm:$0xff] %vm1292_vm3, %v1131_v60 }
 0x219   :  { %1354 = vst.msk [vmem:[#allocation2 + $0x1e8] sm:$0xff] %vm1292_vm3, %v1223_v22 }
 0x21b   :  { %v1420_v5 = vpop.permute.xlu0 %1419  ;;  %v1628_v1 = vld [vmem:[#allocation2 + $0x70] sm:$0xff] }
 0x21c   :  { %2695 = vxpose.xlu1.b32.cont [8/16] (narrow) %v2694_v48, 104  ;;  %v1446_v23 = vpop.permute.xlu1 %1445  ;;  %v1674_v44 = vld [vmem:[#allocation2 + $0x1e0] sm:$0xff]  ;;  %1581 = vst.msk [vmem:[#allocation2 + $0xf8] sm:$0xff] %vm1549_vm4, %v1420_v5 }
 0x21d   :  { %1594 = vst.msk [vmem:[#allocation2 + $0x160] sm:$0xff] %vm1549_vm4, %v1446_v23  ;;  %v2607_v12 = vpack.i.bf16 %v1674_v44, %v1642_v24  ;;  %v864_v24 = vpop.f32.mrb[1].mxu0 }
 0x21e   :  { %v942_v8 = vcombine.low %v862_v17, %v864_v24 }
 0x21f   :  { %2608 = vxpose.xlu0.b32.cont [13/16] (narrow) %v2607_v12, 104  ;;  %v1388_v48 = vpop.permute.xlu0 %1387 }
 0x220   :  { %2697 = vxpose.xlu1.b32.cont [9/16] (narrow) %v2696_v34, 104  ;;  %v1191_v55 = vpop.permute.xlu1 %1190  ;;  %1565 = vst.msk [vmem:[#allocation2 + $0x78] sm:$0xff] %vm1549_vm4, %v1388_v48 }
 0x221   :  { %1338 = vst.msk [vmem:[#allocation2 + $0x168] sm:$0xff] %vm1292_vm3, %v1191_v55 }
 0x223   :  { %v1645_v58 = vld [vmem:[#allocation2 + $0xf8] sm:$0xff] }
 0x224   :  { %2699 = vxpose.xlu1.b32.cont [10/16] (narrow) %v2698_v25, 104  ;;  %v1480_v19 = vpop.permute.xlu1 %1479  ;;  %v2541_v0 = vpack.c.bf16 %v1645_v58, %v1644_v51  ;;  %v1658_v11 = vld [vmem:[#allocation2 + $0x160] sm:$0xff] }
 0x225   :  { %1611 = vst.msk [vmem:[#allocation2 + $0x1e8] sm:$0xff] %vm1549_vm4, %v1480_v19  ;;  %v2704_v9 = vpack.i.bf16 %v1658_v11, %v4673_v29  ;;  %v4960_v29 = vld [vmem:[#allocation7_spill] sm:$0xff] }
 0x226   :  { %2542 = vmatprep.subr.bf16.mxu0 %v2541_v0  ;;  %v4722_v59 = vsub.s32 %v946_v42, %v4960_v29 }
 0x227   :  { %v1629_v54 = vld [vmem:[#allocation2 + $0x78] sm:$0xff] }
 0x228   :  { %2701 = vxpose.xlu1.b32.cont [11/16] (narrow) %v2700_v4, 104  ;;  %v1225_v45 = vpop.permute.xlu1 %1224  ;;  %v2543_v46 = vpack.c.bf16 %v1629_v54, %v1628_v1  ;;  %v4725_v37 = vrot.slane %v942_v8, %v4722_v59 }
 0x229   :  { %1355 = vst.msk [vmem:[#allocation2 + $0x1f0] sm:$0xff] %vm1292_vm3, %v1225_v45 }
 0x22a   :  { %2544 = vmatpush3.bf16.msra.mxu0 %v2543_v46 }
 0x22c   :  { %2703 = vxpose.xlu1.b32.cont [12/16] (narrow) %v2702_v43, 104  ;;  %v1448_v14 = vpop.permute.xlu1 %1447  ;;  %v1675_v6 = vld [vmem:[#allocation2 + $0x1e8] sm:$0xff] }
 0x22d   :  { %1595 = vst.msk [vmem:[#allocation2 + $0x168] sm:$0xff] %vm1549_vm4, %v1448_v14  ;;  %v2569_v63 = vpack.c.bf16 %v1675_v6, %v1674_v44  ;;  %v2609_v21 = vpack.i.bf16 %v1675_v6, %v4662_v15  ;;  %v935_v15 = vpop.f32.mrb[1].mxu1 }
 0x22e   :  { %v943_v16 = vcombine.low %v933_v47, %v935_v15 }
 0x22f   :  { %2570 = vmatprep.subr.bf16.mxu1 %v2569_v63  ;;  %2610 = vxpose.xlu0.b32.cont [14/16] (narrow) %v2609_v21, 104 }
 0x230   :  { %2705 = vxpose.xlu1.b32.cont [13/16] (narrow) %v2704_v9, 104  ;;  %v1193_v35 = vpop.permute.xlu1 %1192  ;;  %v4728_v30 = vrot.slane %v943_v16, %v4722_v59 }
 0x231   :  { %1339 = vst.msk [vmem:[#allocation2 + $0x170] sm:$0xff] %vm1292_vm3, %v1193_v35 }
 0x232   :  { %v958_v2 = vcombine.low %v4725_v37, %v4728_v30 }
 0x234   :  { %v1659_v52 = vld [vmem:[#allocation2 + $0x168] sm:$0xff]  ;;  %v1482_v32 = vpop.permute.xlu1 %1481 }
 0x235   :  { %v2571_v7 = vpack.c.bf16 %v1659_v52, %v1658_v11  ;;  %1612 = vst.msk [vmem:[#allocation2 + $0x1f0] sm:$0xff] %vm1549_vm4, %v1482_v32  ;;  %v2706_v61 = vpack.i.bf16 %v1659_v52, %v4678_v41 }
 0x237   :  { %2572 = vmatpush3.bf16.msra.mxu1 %v2571_v7  ;;  %2707 = vxpose.xlu1.b32.cont [14/16] (narrow) %v2706_v61, 104 }
 0x238   :  { %v1227_v62 = vpop.permute.xlu1 %1226 }
 0x239   :  { %1356 = vst.msk [vmem:[#allocation2 + $0x1f8] sm:$0xff] %vm1292_vm3, %v1227_v62 }
 0x23c   :  { %v1450_v10 = vpop.permute.xlu1 %1449  ;;  %v1676_v36 = vld [vmem:[#allocation2 + $0x1f0] sm:$0xff] }
 0x23d   :  { %1596 = vst.msk [vmem:[#allocation2 + $0x170] sm:$0xff] %vm1549_vm4, %v1450_v10  ;;  %v2611_v13 = vpack.i.bf16 %v1676_v36, %v1644_v51 }
 0x23f   :  { %2612 = vxpose.xlu0.b32.cont [15/16] (narrow) %v2611_v13, 104 }
 0x240   :  { %v1195_v18 = vpop.permute.xlu1 %1194 }
 0x241   :  { %1340 = vst.msk [vmem:[#allocation2 + $0x178] sm:$0xff] %vm1292_vm3, %v1195_v18 }
 0x244   :  { %v1484_v53 = vpop.permute.xlu1 %1483  ;;  %v1660_v57 = vld [vmem:[#allocation2 + $0x170] sm:$0xff] }
 0x245   :  { %1613 = vst.msk [vmem:[#allocation2 + $0x1f8] sm:$0xff] %vm1549_vm4, %v1484_v53  ;;  %v2708_v33 = vpack.i.bf16 %v1660_v57, %v1628_v1 }
 0x247   :  { %2709 = vxpose.xlu1.b32.cont [15/16] (narrow) %v2708_v33, 104 }
 0x248   :  { %v1452_v56 = vpop.permute.xlu1 %1451 }
 0x249   :  { %1597 = vst.msk [vmem:[#allocation2 + $0x178] sm:$0xff] %vm1549_vm4, %v1452_v56 }
 0x24c   :  { %v1677_v27 = vld [vmem:[#allocation2 + $0x1f8] sm:$0xff] }
 0x24d   :  { %v2573_v38 = vpack.c.bf16 %v1677_v27, %v1676_v36  ;;  %v2613_v31 = vpack.i.bf16 %v1677_v27, %v1645_v58 }
 0x24f   :  { %2574 = vmatprep.subr.bf16.mxu1 %v2573_v38  ;;  %2614 = vxpose.xlu0.b32.end [16/16] (narrow) %v2613_v31, 104 }
 0x250   :  { %v1661_v49 = vld [vmem:[#allocation2 + $0x178] sm:$0xff] }
 0x251   :  { %v2575_v40 = vpack.c.bf16 %v1661_v49, %v1660_v57  ;;  %v2710_v41 = vpack.i.bf16 %v1661_v49, %v1629_v54 }
 0x253   :  { %2576 = vmatpush3.bf16.msra.mxu1 %v2575_v40  ;;  %2711 = vxpose.xlu1.b32.end [16/16] (narrow) %v2710_v41, 104 }
 0x293   :  { %v2615_v39 = vpop.trf.xlu0 }
 0x294   :  { %v2616_v20 = vunpack.i.l.bf16 %v2615_v39  ;;  %v2619_v26 = vunpack.i.h.bf16 %v2615_v39 }
 0x296   :  { %1883 = vmatprep.mubr.f32.mxu0 %v2616_v20  ;;  %2013 = vmatprep.mubr.f32.mxu1 %v2619_v26 }
 0x297   :  { %v2712_v22 = vpop.trf.xlu1  ;;  %v2620_v28 = vpop.trf.xlu0 }
 0x298   :  { %v2716_v23 = vunpack.i.h.bf16 %v2712_v22  ;;  %v2713_v60 = vunpack.i.l.bf16 %v2712_v22  ;;  %v2621_v44 = vunpack.i.l.bf16 %v2620_v28  ;;  %v2624_v12 = vunpack.i.h.bf16 %v2620_v28 }
 0x29a   :  { %1884 = vmatmul.mubr.f32.vlgmr.msra.gmra.mrb[2].mxu0 %v2713_v60  ;;  %2014 = vmatmul.mubr.f32.vlgmr.msra.gmra.mrb[2].mxu1 %v2716_v23 }
 0x29b   :  { %v2717_v34 = vpop.trf.xlu1  ;;  %1888 = vmatprep.mubr.f32.mxu0 %v2621_v44  ;;  %2018 = vmatprep.mubr.f32.mxu1 %v2624_v12  ;;  %v2625_v55 = vpop.trf.xlu0 }
 0x29c   :  { %v2718_v5 = vunpack.i.l.bf16 %v2717_v34  ;;  %v2721_v25 = vunpack.i.h.bf16 %v2717_v34  ;;  %v2626_v19 = vunpack.i.l.bf16 %v2625_v55  ;;  %v2629_v48 = vunpack.i.h.bf16 %v2625_v55 }
 0x29e   :  { %1889 = vmatmul.mubr.f32.gmra.mrb[4].mxu0 %v2718_v5  ;;  %2019 = vmatmul.mubr.f32.gmra.mrb[4].mxu1 %v2721_v25 }
 0x29f   :  { %v2722_v4 = vpop.trf.xlu1  ;;  %v2630_v51 = vpop.trf.xlu0  ;;  %1893 = vmatprep.mubr.f32.mxu0 %v2626_v19  ;;  %2023 = vmatprep.mubr.f32.mxu1 %v2629_v48 }
 0x2a0   :  { %v2723_v45 = vunpack.i.l.bf16 %v2722_v4  ;;  %v2726_v58 = vunpack.i.h.bf16 %v2722_v4  ;;  %v2631_v0 = vunpack.i.l.bf16 %v2630_v51  ;;  %v2634_v43 = vunpack.i.h.bf16 %v2630_v51 }
 0x2a2   :  { %1894 = vmatmul.mubr.f32.gmra.mrb[6].mxu0 %v2723_v45  ;;  %2024 = vmatmul.mubr.f32.gmra.mrb[6].mxu1 %v2726_v58  ;;  %v965_v58 = vrot.slane %v958_v2, %v4722_v59 }
 0x2a3   :  { %v2727_v1 = vpop.trf.xlu1  ;;  %v2635_v11 = vpop.trf.xlu0  ;;  %1898 = vmatprep.mubr.f32.mxu0 %v2631_v0  ;;  %2028 = vmatprep.mubr.f32.mxu1 %v2634_v43  ;;  %v4961_v0 = vlaneseq  ;;  %v2844_v43 = vmov 0.0  }
 0x2a4   :  { %v2728_v14 = vunpack.i.l.bf16 %v2727_v1  ;;  %v2731_v6 = vunpack.i.h.bf16 %v2727_v1  ;;  %v2636_v54 = vunpack.i.l.bf16 %v2635_v11  ;;  %v2639_v63 = vunpack.i.h.bf16 %v2635_v11  ;;  %67 = vst.msk [vmem:[%s4895_s3] sm:$0xff] %vm66_vm6, %v2844_v43  ;;  %68 = vst.msk [vmem:[%s4895_s3 + $0x8] sm:$0xff] %vm66_vm6, %v2844_v43 }
 0x2a5   :  { %vm969_vm5 = vcmp.lt.s32.totalorder %v4961_v0, 512  ;;  %69 = vst.msk [vmem:[%s4895_s3 + $0x10] sm:$0xff] %vm66_vm6, %v2844_v43  ;;  %70 = vst.msk [vmem:[%s4895_s3 + $0x18] sm:$0xff] %vm66_vm6, %v2844_v43 }
 0x2a6   :  { %1899 = vmatmul.mubr.f32.gmra.mrb[8].mxu0 %v2728_v14  ;;  %2029 = vmatmul.mubr.f32.gmra.mrb[8].mxu1 %v2731_v6  ;;  %971 = vst.msk [vmem:[#allocation3] sm:$0xf] %vm969_vm5, %v965_v58 }
 0x2a7   :  { %v2732_v21 = vpop.trf.xlu1  ;;  %v2640_v46 = vpop.trf.xlu0  ;;  %1903 = vmatprep.mubr.f32.mxu0 %v2636_v54  ;;  %2033 = vmatprep.mubr.f32.mxu1 %v2639_v63  ;;  %71 = vst.msk [vmem:[%s4895_s3 + $0x20] sm:$0xff] %vm66_vm6, %v2844_v43  ;;  %72 = vst.msk [vmem:[%s4895_s3 + $0x28] sm:$0xff] %vm66_vm6, %v2844_v43 }
 0x2a8   :  { %v2733_v9 = vunpack.i.l.bf16 %v2732_v21  ;;  %v2736_v35 = vunpack.i.h.bf16 %v2732_v21  ;;  %v2641_v52 = vunpack.i.l.bf16 %v2640_v46  ;;  %v2644_v32 = vunpack.i.h.bf16 %v2640_v46  ;;  %73 = vst.msk [vmem:[%s4895_s3 + $0x30] sm:$0xff] %vm66_vm6, %v2844_v43  ;;  %74 = vst.msk [vmem:[%s4895_s3 + $0x38] sm:$0xff] %vm66_vm6, %v2844_v43 }
 0x2a9   :  { %75 = vst.msk [vmem:[%s4895_s3 + $0x40] sm:$0xff] %vm66_vm6, %v2844_v43  ;;  %76 = vst.msk [vmem:[%s4895_s3 + $0x48] sm:$0xff] %vm66_vm6, %v2844_v43 }
 0x2aa   :  { %1904 = vmatmul.mubr.f32.gmra.mrb[10].mxu0 %v2733_v9  ;;  %2034 = vmatmul.mubr.f32.gmra.mrb[10].mxu1 %v2736_v35  ;;  %77 = vst.msk [vmem:[%s4895_s3 + $0x50] sm:$0xff] %vm66_vm6, %v2844_v43  ;;  %78 = vst.msk [vmem:[%s4895_s3 + $0x58] sm:$0xff] %vm66_vm6, %v2844_v43 }
 0x2ab   :  { %v2737_v7 = vpop.trf.xlu1  ;;  %v2645_v61 = vpop.trf.xlu0  ;;  %1908 = vmatprep.mubr.f32.mxu0 %v2641_v52  ;;  %2038 = vmatprep.mubr.f32.mxu1 %v2644_v32  ;;  %80 = vst.msk [vmem:[%s4895_s3 + $0x60] sm:$0x1] %vm79_vm7, %v2844_v43 }
 0x2ac   :  { %v2738_v62 = vunpack.i.l.bf16 %v2737_v7  ;;  %v2741_v10 = vunpack.i.h.bf16 %v2737_v7  ;;  %v2646_v36 = vunpack.i.l.bf16 %v2645_v61  ;;  %v2649_v13 = vunpack.i.h.bf16 %v2645_v61 }
 0x2ae   :  { %1909 = vmatmul.mubr.f32.gmra.mrb[12].mxu0 %v2738_v62  ;;  %2039 = vmatmul.mubr.f32.gmra.mrb[12].mxu1 %v2741_v10 }
 0x2af   :  { %v2742_v18 = vpop.trf.xlu1  ;;  %v2650_v53 = vpop.trf.xlu0  ;;  %1913 = vmatprep.mubr.f32.mxu0 %v2646_v36  ;;  %2043 = vmatprep.mubr.f32.mxu1 %v2649_v13 }
 0x2b0   :  { %v2743_v57 = vunpack.i.l.bf16 %v2742_v18  ;;  %v2746_v33 = vunpack.i.h.bf16 %v2742_v18  ;;  %v2651_v56 = vunpack.i.l.bf16 %v2650_v53  ;;  %v2654_v17 = vunpack.i.h.bf16 %v2650_v53 }
 0x2b2   :  { %1914 = vmatmul.mubr.f32.gmra.mrb[14].mxu0 %v2743_v57  ;;  %2044 = vmatmul.mubr.f32.gmra.mrb[14].mxu1 %v2746_v33 }
 0x2b3   :  { %v2747_v47 = vpop.trf.xlu1  ;;  %v2655_v27 = vpop.trf.xlu0  ;;  %1918 = vmatprep.mubr.f32.mxu0 %v2651_v56  ;;  %2048 = vmatprep.mubr.f32.mxu1 %v2654_v17 }
 0x2b4   :  { %v2748_v24 = vunpack.i.l.bf16 %v2747_v47  ;;  %v2751_v50 = vunpack.i.h.bf16 %v2747_v47  ;;  %v2656_v3 = vunpack.i.l.bf16 %v2655_v27  ;;  %v2659_v15 = vunpack.i.h.bf16 %v2655_v27 }
 0x2b6   :  { %1919 = vmatmul.mubr.f32.gmra.mrb[16].mxu0 %v2748_v24  ;;  %2049 = vmatmul.mubr.f32.gmra.mrb[16].mxu1 %v2751_v50 }
 0x2b7   :  { %v2752_v38 = vpop.trf.xlu1  ;;  %v2660_v31 = vpop.trf.xlu0  ;;  %1923 = vmatprep.mubr.f32.mxu0 %v2656_v3  ;;  %2053 = vmatprep.mubr.f32.mxu1 %v2659_v15 }
 0x2b8   :  { %v2753_v8 = vunpack.i.l.bf16 %v2752_v38  ;;  %v2756_v16 = vunpack.i.h.bf16 %v2752_v38  ;;  %v2661_v42 = vunpack.i.l.bf16 %v2660_v31  ;;  %v2664_v49 = vunpack.i.h.bf16 %v2660_v31 }
 0x2ba   :  { %1924 = vmatmul.mubr.f32.gmra.mrb[18].mxu0 %v2753_v8  ;;  %2054 = vmatmul.mubr.f32.gmra.mrb[18].mxu1 %v2756_v16 }
 0x2bb   :  { %v2757_v29 = vpop.trf.xlu1  ;;  %v2665_v40 = vpop.trf.xlu0  ;;  %1928 = vmatprep.mubr.f32.mxu0 %v2661_v42  ;;  %2058 = vmatprep.mubr.f32.mxu1 %v2664_v49 }
 0x2bc   :  { %v2758_v41 = vunpack.i.l.bf16 %v2757_v29  ;;  %v2761_v39 = vunpack.i.h.bf16 %v2757_v29  ;;  %v2666_v20 = vunpack.i.l.bf16 %v2665_v40  ;;  %v2669_v26 = vunpack.i.h.bf16 %v2665_v40 }
 0x2be   :  { %1929 = vmatmul.mubr.f32.gmra.mrb[20].mxu0 %v2758_v41  ;;  %2059 = vmatmul.mubr.f32.gmra.mrb[20].mxu1 %v2761_v39 }
 0x2bf   :  { %v2762_v22 = vpop.trf.xlu1  ;;  %v2670_v28 = vpop.trf.xlu0  ;;  %1933 = vmatprep.mubr.f32.mxu0 %v2666_v20  ;;  %2063 = vmatprep.mubr.f32.mxu1 %v2669_v26 }
 0x2c0   :  { %v2763_v23 = vunpack.i.l.bf16 %v2762_v22  ;;  %v2766_v60 = vunpack.i.h.bf16 %v2762_v22  ;;  %v2671_v44 = vunpack.i.l.bf16 %v2670_v28  ;;  %v2674_v12 = vunpack.i.h.bf16 %v2670_v28 }
 0x2c2   :  { %1934 = vmatmul.mubr.f32.gmra.mrb[22].mxu0 %v2763_v23  ;;  %2064 = vmatmul.mubr.f32.gmra.mrb[22].mxu1 %v2766_v60 }
 0x2c3   :  { %v2767_v34 = vpop.trf.xlu1  ;;  %v2675_v55 = vpop.trf.xlu0  ;;  %1938 = vmatprep.mubr.f32.mxu0 %v2671_v44  ;;  %2068 = vmatprep.mubr.f32.mxu1 %v2674_v12 }
 0x2c4   :  { %v2679_v5 = vunpack.i.h.bf16 %v2675_v55  ;;  %v2676_v25 = vunpack.i.l.bf16 %v2675_v55  ;;  %v2768_v19 = vunpack.i.l.bf16 %v2767_v34  ;;  %v2771_v48 = vunpack.i.h.bf16 %v2767_v34 }
 0x2c6   :  { %1939 = vmatmul.mubr.f32.gmra.mrb[24].mxu0 %v2768_v19  ;;  %2069 = vmatmul.mubr.f32.gmra.mrb[24].mxu1 %v2771_v48 }
 0x2c7   :  { %v2772_v4 = vpop.trf.xlu1  ;;  %1943 = vmatprep.mubr.f32.mxu0 %v2676_v25  ;;  %2073 = vmatprep.mubr.f32.mxu1 %v2679_v5 }
 0x2c8   :  { %v2776_v51 = vunpack.i.h.bf16 %v2772_v4  ;;  %v2773_v45 = vunpack.i.l.bf16 %v2772_v4 }
 0x2ca   :  { %1944 = vmatmul.mubr.f32.gmra.mrb[26].mxu0 %v2773_v45  ;;  %2074 = vmatmul.mubr.f32.gmra.mrb[26].mxu1 %v2776_v51 }
 0x2cb   :  { %2827 = shalt.err (!%p2824_p4)
}
 0x2cc   :  { %s2828_s18 = scalar_lea.hbm %s4896_s4, 64 }
 0x2cd   :  { %p2829_p5 = scmp.ne.s32.totalorder %s4896_s4, %s2828_s18  ;;  %p2832_p6 = scmp.lt.u32.totalorder %s2828_s18, %s4896_s4 }
 0x2cf   :  { %p2834_p7 = pnand %p2832_p6, %p2829_p5 }
 0x2d1   :  { %2837 = shalt.err (!%p2834_p7)
}
 0x2d2   :  { %2122 = dma.vmem_to_hbm [thread:$0]  %s2120_s0, 64, %s4896_s4, [#allocation4]   ;;  %v1678_v14 = vld [vmem:[%s4895_s3] sm:$0xff]  ;;  %v1679_v32 = vld [vmem:[%s4895_s3 + $0x8] sm:$0xff]  ;;  %v1680_v57 = vld [vmem:[%s4895_s3 + $0x10] sm:$0xff] }
 0x2d3   :  { %v1681_v15 = vld [vmem:[%s4895_s3 + $0x18] sm:$0xff]  ;;  %v1682_v41 = vld [vmem:[%s4895_s3 + $0x20] sm:$0xff]  ;;  %v1683_v12 = vld [vmem:[%s4895_s3 + $0x28] sm:$0xff] }
 0x2d4   :  { %v1684_v45 = vld [vmem:[%s4895_s3 + $0x30] sm:$0xff] }
 0x36d   :  { %v2307_v59 = vpop.f32.mrb[2].mxu0  ;;  %v2378_v37 = vpop.f32.mrb[2].mxu1 }
 0x36e   :  { %v2308_v30 = vpop.f32.mrb[3].mxu0  ;;  %v2379_v2 = vpop.f32.mrb[3].mxu1 }
 0x36f   :  { %v2309_v1 = vadd.f32 %v2308_v30, %v2307_v59  ;;  %v2380_v11 = vadd.f32 %v2379_v2, %v2378_v37 }
 0x371   :  { %v2016_v6 = vadd.f32 %v2380_v11, %v2309_v1  ;;  %v2310_v54 = vpop.f32.mrb[4].mxu0  ;;  %v2381_v63 = vpop.f32.mrb[4].mxu1  ;;  %v1685_v11 = vld [vmem:[%s4895_s3 + $0x38] sm:$0xff] }
 0x372   :  { %v2311_v46 = vpop.f32.mrb[5].mxu0  ;;  %v2382_v9 = vpop.f32.mrb[5].mxu1 }
 0x373   :  { %v2079_v21 = vadd.f32 %v2016_v6, %v1678_v14  ;;  %v2312_v35 = vadd.f32 %v2311_v46, %v2310_v54  ;;  %v2383_v52 = vadd.f32 %v2382_v9, %v2381_v63 }
 0x375   :  { %2093 = vst.msk [vmem:[%s4895_s3] sm:$0xff] %vm66_vm6, %v2079_v21  ;;  %v2021_v7 = vadd.f32 %v2383_v52, %v2312_v35  ;;  %v2313_v61 = vpop.f32.mrb[6].mxu0  ;;  %v2384_v62 = vpop.f32.mrb[6].mxu1  ;;  %v1686_v52 = vld [vmem:[%s4895_s3 + $0x40] sm:$0xff] }
 0x376   :  { %v2314_v10 = vpop.f32.mrb[7].mxu0  ;;  %v2385_v36 = vpop.f32.mrb[7].mxu1 }
 0x377   :  { %v2080_v13 = vadd.f32 %v2021_v7, %v1679_v32  ;;  %v2315_v18 = vadd.f32 %v2314_v10, %v2313_v61  ;;  %v2386_v53 = vadd.f32 %v2385_v36, %v2384_v62 }
 0x379   :  { %2094 = vst.msk [vmem:[%s4895_s3 + $0x8] sm:$0xff] %vm66_vm6, %v2080_v13  ;;  %v2026_v33 = vadd.f32 %v2386_v53, %v2315_v18  ;;  %v2316_v56 = vpop.f32.mrb[8].mxu0  ;;  %v2387_v17 = vpop.f32.mrb[8].mxu1  ;;  %v1687_v53 = vld [vmem:[%s4895_s3 + $0x48] sm:$0xff] }
 0x37a   :  { %v2317_v47 = vpop.f32.mrb[9].mxu0  ;;  %v2388_v27 = vpop.f32.mrb[9].mxu1 }
 0x37b   :  { %v2081_v24 = vadd.f32 %v2026_v33, %v1680_v57  ;;  %v2318_v50 = vadd.f32 %v2317_v47, %v2316_v56  ;;  %v2389_v3 = vadd.f32 %v2388_v27, %v2387_v17 }
 0x37d   :  { %2095 = vst.msk [vmem:[%s4895_s3 + $0x10] sm:$0xff] %vm66_vm6, %v2081_v24  ;;  %v2031_v38 = vadd.f32 %v2389_v3, %v2318_v50  ;;  %v2319_v31 = vpop.f32.mrb[10].mxu0  ;;  %v2390_v8 = vpop.f32.mrb[10].mxu1  ;;  %v1688_v3 = vld [vmem:[%s4895_s3 + $0x50] sm:$0xff] }
 0x37e   :  { %v2320_v16 = vpop.f32.mrb[11].mxu0  ;;  %v2391_v42 = vpop.f32.mrb[11].mxu1 }
 0x37f   :  { %v2082_v49 = vadd.f32 %v2031_v38, %v1681_v15  ;;  %v2321_v29 = vadd.f32 %v2320_v16, %v2319_v31  ;;  %v2392_v40 = vadd.f32 %v2391_v42, %v2390_v8 }
 0x381   :  { %2096 = vst.msk [vmem:[%s4895_s3 + $0x18] sm:$0xff] %vm66_vm6, %v2082_v49  ;;  %v2036_v39 = vadd.f32 %v2392_v40, %v2321_v29  ;;  %v2322_v20 = vpop.f32.mrb[12].mxu0  ;;  %v2393_v26 = vpop.f32.mrb[12].mxu1  ;;  %v1689_v40 = vld [vmem:[%s4895_s3 + $0x58] sm:$0xff] }
 0x382   :  { %v2323_v22 = vpop.f32.mrb[13].mxu0  ;;  %v2394_v28 = vpop.f32.mrb[13].mxu1 }
 0x383   :  { %v2083_v23 = vadd.f32 %v2036_v39, %v1682_v41  ;;  %v2324_v60 = vadd.f32 %v2323_v22, %v2322_v20  ;;  %v2395_v44 = vadd.f32 %v2394_v28, %v2393_v26 }
 0x385   :  { %2097 = vst.msk [vmem:[%s4895_s3 + $0x20] sm:$0xff] %vm66_vm6, %v2083_v23  ;;  %v2041_v34 = vadd.f32 %v2395_v44, %v2324_v60  ;;  %v2325_v55 = vpop.f32.mrb[14].mxu0  ;;  %v2396_v5 = vpop.f32.mrb[14].mxu1  ;;  %v1690_v44 = vld [vmem:[%s4895_s3 + $0x60] sm:$0x1] }
 0x386   :  { %v2326_v25 = vpop.f32.mrb[15].mxu0  ;;  %v2397_v19 = vpop.f32.mrb[15].mxu1 }
 0x387   :  { %v2084_v48 = vadd.f32 %v2041_v34, %v1683_v12  ;;  %v2327_v4 = vadd.f32 %v2326_v25, %v2325_v55  ;;  %v2398_v51 = vadd.f32 %v2397_v19, %v2396_v5 }
 0x389   :  { %2098 = vst.msk [vmem:[%s4895_s3 + $0x28] sm:$0xff] %vm66_vm6, %v2084_v48  ;;  %v2046_v58 = vadd.f32 %v2398_v51, %v2327_v4  ;;  %v2328_v0 = vpop.f32.mrb[16].mxu0  ;;  %v2399_v43 = vpop.f32.mrb[16].mxu1 }
 0x38a   :  { %v2329_v59 = vpop.f32.mrb[17].mxu0  ;;  %v2400_v37 = vpop.f32.mrb[17].mxu1 }
 0x38b   :  { %v2085_v30 = vadd.f32 %v2046_v58, %v1684_v45  ;;  %v2330_v2 = vadd.f32 %v2329_v59, %v2328_v0  ;;  %v2401_v1 = vadd.f32 %v2400_v37, %v2399_v43 }
 0x38d   :  { %2099 = vst.msk [vmem:[%s4895_s3 + $0x30] sm:$0xff] %vm66_vm6, %v2085_v30  ;;  %v2051_v14 = vadd.f32 %v2401_v1, %v2330_v2  ;;  %v2331_v6 = vpop.f32.mrb[18].mxu0  ;;  %v2402_v54 = vpop.f32.mrb[18].mxu1 }
 0x38e   :  { %v2332_v63 = vpop.f32.mrb[19].mxu0  ;;  %v2403_v21 = vpop.f32.mrb[19].mxu1 }
 0x38f   :  { %v2086_v46 = vadd.f32 %v2051_v14, %v1685_v11  ;;  %v2333_v9 = vadd.f32 %v2332_v63, %v2331_v6  ;;  %v2404_v35 = vadd.f32 %v2403_v21, %v2402_v54 }
 0x391   :  { %2100 = vst.msk [vmem:[%s4895_s3 + $0x38] sm:$0xff] %vm66_vm6, %v2086_v46  ;;  %v2056_v32 = vadd.f32 %v2404_v35, %v2333_v9  ;;  %v2334_v7 = vpop.f32.mrb[20].mxu0  ;;  %v2405_v61 = vpop.f32.mrb[20].mxu1 }
 0x392   :  { %v2335_v62 = vpop.f32.mrb[21].mxu0  ;;  %v2406_v10 = vpop.f32.mrb[21].mxu1 }
 0x393   :  { %v2087_v36 = vadd.f32 %v2056_v32, %v1686_v52  ;;  %v2336_v13 = vadd.f32 %v2335_v62, %v2334_v7  ;;  %v2407_v18 = vadd.f32 %v2406_v10, %v2405_v61 }
 0x395   :  { %2101 = vst.msk [vmem:[%s4895_s3 + $0x40] sm:$0xff] %vm66_vm6, %v2087_v36  ;;  %v2061_v57 = vadd.f32 %v2407_v18, %v2336_v13  ;;  %v2337_v33 = vpop.f32.mrb[22].mxu0  ;;  %v2408_v56 = vpop.f32.mrb[22].mxu1 }
 0x396   :  { %v2338_v17 = vpop.f32.mrb[23].mxu0  ;;  %v2409_v47 = vpop.f32.mrb[23].mxu1 }
 0x397   :  { %v2088_v27 = vadd.f32 %v2061_v57, %v1687_v53  ;;  %v2339_v24 = vadd.f32 %v2338_v17, %v2337_v33  ;;  %v2410_v50 = vadd.f32 %v2409_v47, %v2408_v56 }
 0x399   :  { %2102 = vst.msk [vmem:[%s4895_s3 + $0x48] sm:$0xff] %vm66_vm6, %v2088_v27  ;;  %v2066_v15 = vadd.f32 %v2410_v50, %v2339_v24  ;;  %v2340_v38 = vpop.f32.mrb[24].mxu0  ;;  %v2411_v31 = vpop.f32.mrb[24].mxu1 }
 0x39a   :  { %v2341_v8 = vpop.f32.mrb[25].mxu0  ;;  %v2412_v16 = vpop.f32.mrb[25].mxu1 }
 0x39b   :  { %v2089_v42 = vadd.f32 %v2066_v15, %v1688_v3  ;;  %v2342_v49 = vadd.f32 %v2341_v8, %v2340_v38  ;;  %v2413_v29 = vadd.f32 %v2412_v16, %v2411_v31 }
 0x39d   :  { %2103 = vst.msk [vmem:[%s4895_s3 + $0x50] sm:$0xff] %vm66_vm6, %v2089_v42  ;;  %v2071_v41 = vadd.f32 %v2413_v29, %v2342_v49  ;;  %v2343_v39 = vpop.f32.mrb[26].mxu0  ;;  %v2414_v20 = vpop.f32.mrb[26].mxu1 }
 0x39e   :  { %v2344_v26 = vpop.f32.mrb[27].mxu0  ;;  %v2415_v22 = vpop.f32.mrb[27].mxu1 }
 0x39f   :  { %v2090_v28 = vadd.f32 %v2071_v41, %v1689_v40  ;;  %v2345_v23 = vadd.f32 %v2344_v26, %v2343_v39  ;;  %v2416_v60 = vadd.f32 %v2415_v22, %v2414_v20 }
 0x3a1   :  { %2104 = vst.msk [vmem:[%s4895_s3 + $0x58] sm:$0xff] %vm66_vm6, %v2090_v28  ;;  %v2076_v12 = vadd.f32 %v2416_v60, %v2345_v23 }
 0x3a3   :  { %v2091_v34 = vadd.f32 %v2076_v12, %v1690_v44 }
 0x3a5   :  { %2106 = vst.msk [vmem:[%s4895_s3 + $0x60] sm:$0x1] %vm79_vm7, %v2091_v34 }
 0x3a6   :  { %2838 = dma.done.wait [#allocation4], 64  }
 0x3a7   :  { %2839 = vsyncadd [#allocation4], 4294967232 }
 0x3a8   :  { %2128 = vsyncpa [#allocation4], 1 }

</bundles_post_ra>
